<compile_context>
chip_gen: v7x
topology: tpu7x:2x2x1
jax: 0.10.0
libtpu: 0.0.40
codegen_flags: <defaults>
</compile_context>

<pallas_src>
import jax
import jax.numpy as jnp
from jax.experimental import pallas as pl
from jax.experimental.pallas import tpu as pltpu


def _round_up(x, m):
    return ((x + m - 1) // m) * m


def _pad2(a, rows, cols):
    return jnp.pad(a, ((0, rows - a.shape[0]), (0, cols - a.shape[1])))


def _make_kernel(Hp, Kp, K_actual, V_actual, tv):
    NEG = -1e30

    def kernel(x_ref, eps_ref,
               w_enc_ref, b11_ref, w12_ref, b12_ref, w2122_ref, b2122_ref,
               wg1_ref, bg1_ref, wg2_ref, bg2_ref,
               wg3_ref, bg3_ref, wg4_ref, bg4_ref,
               wd1_ref, bd1_ref,
               slab_ref, dec_ref,
               acc_ref, g_ref, m_ref, l_ref):
        p = pl.program_id(1)
        v = pl.program_id(2)
        nv = pl.num_programs(2)

        def dec_logits():
            lg = jnp.dot(g_ref[...], wd1_ref[...],
                         preferred_element_type=jnp.float32) + bd1_ref[...]
            col = jax.lax.broadcasted_iota(jnp.int32, lg.shape, 1) + v * tv
            return jnp.where(col < V_actual, lg, NEG)   # mask padded vocab cols

        # ---------------- phase 0: encoder, streamed V reduction ----------------
        @pl.when(p == 0)
        def _phase0():
            @pl.when(v == 0)
            def _():
                acc_ref[...] = jnp.zeros_like(acc_ref)

            # x tile (tb, tv) bf16  @  [w11 | ws] tile (tv, 2*Hp) bf16 -> f32 acc
            acc_ref[...] += jnp.dot(x_ref[...], w_enc_ref[...],
                                    preferred_element_type=jnp.float32)

            @pl.when(v == nv - 1)
            def _finalize():
                acc = acc_ref[...]
                h11 = acc[:, :Hp]          # x @ w11
                hs = acc[:, Hp:]           # x @ ws (bias-free skip path)

                e1 = jnp.maximum(h11 + b11_ref[...], 0.0)
                e1 = jnp.dot(e1.astype(jnp.bfloat16), w12_ref[...],
                             preferred_element_type=jnp.float32) + b12_ref[...]
                e1 = jnp.maximum(e1, 0.0) + hs

                ml = jnp.dot(e1.astype(jnp.bfloat16), w2122_ref[...],
                             preferred_element_type=jnp.float32) + b2122_ref[...]
                mu = ml[:, :Kp]
                logvar = ml[:, Kp:]

                # reparameterize (training): z = eps * exp(0.5*logvar) + mu
                std = jnp.exp(0.5 * logvar)
                z = eps_ref[...] * std + mu

                # theta = softmax(z) over the real K columns only (exact)
                kcol = jax.lax.broadcasted_iota(jnp.int32, z.shape, 1)
                z_m = jnp.where(kcol < K_actual, z, NEG)
                z_max = jnp.max(z_m, axis=-1, keepdims=True)
                ez = jnp.exp(z_m - z_max)
                theta = ez / jnp.sum(ez, axis=-1, keepdims=True)

                def glayer(h, w_ref, b_ref):
                    return jnp.tanh(
                        jnp.dot(h.astype(jnp.bfloat16), w_ref[...],
                                preferred_element_type=jnp.float32) + b_ref[...])

                g = glayer(z, wg1_ref, bg1_ref)
                g = glayer(g, wg2_ref, bg2_ref)
                g = glayer(g, wg3_ref, bg3_ref)
                g = glayer(g, wg4_ref, bg4_ref)
                g = g + z

                g_ref[...] = g.astype(jnp.bfloat16)
                # single lane-dense full-block store: [mu | logvar | z | theta | g]
                slab_ref[...] = jnp.concatenate([mu, logvar, z, theta, g], axis=-1)

        # ------------- phase 1: decoder online softmax stats over V -------------
        @pl.when(p == 1)
        def _phase1():
            @pl.when(v == 0)
            def _():
                m_ref[...] = jnp.full(m_ref.shape, -jnp.inf, m_ref.dtype)
                l_ref[...] = jnp.zeros(l_ref.shape, l_ref.dtype)

            lg = dec_logits()
            m_prev = m_ref[...]
            m_new = jnp.maximum(m_prev, jnp.max(lg, axis=-1, keepdims=True))
            l_ref[...] = (l_ref[...] * jnp.exp(m_prev - m_new)
                          + jnp.sum(jnp.exp(lg - m_new), axis=-1, keepdims=True))
            m_ref[...] = m_new

            @pl.when(v == nv - 1)
            def _():
                # exact reciprocal: decoder rows must sum to 1 (feeds NLL/KL loss)
                l_ref[...] = 1.0 / l_ref[...]

        # ------------- phase 2: write normalized decoder tiles ------------------
        @pl.when(p == 2)
        def _phase2():
            lg = dec_logits()
            dec_ref[...] = (jnp.exp(lg - m_ref[...]) * l_ref[...]).astype(dec_ref.dtype)

    return kernel


def init_ntm_params(key, bow_vocab_size, topic_num, hidden_dim=500):
    """Deterministic init mimicking torch.nn.Linear default (U[-1/sqrt(fan_in), +])."""
    def linear(k, fan_in, fan_out, bias=True):
        kw, kb = jax.random.split(k)
        bound = 1.0 / jnp.sqrt(jnp.float32(fan_in))
        w = jax.random.uniform(kw, (fan_in, fan_out), jnp.float32, -bound, bound)
        if not bias:
            return w, None
        b = jax.random.uniform(kb, (1, fan_out), jnp.float32, -bound, bound)
        return w, b

    keys = jax.random.split(key, 11)
    V, H, K = bow_vocab_size, hidden_dim, topic_num
    p = {}
    p["w11"], p["b11"] = linear(keys[0], V, H)
    p["w12"], p["b12"] = linear(keys[1], H, H)
    p["w21"], p["b21"] = linear(keys[2], H, K)
    p["w22"], p["b22"] = linear(keys[3], H, K)
    p["ws"], _ = linear(keys[4], V, H, bias=False)
    p["wg1"], p["bg1"] = linear(keys[5], K, K)
    p["wg2"], p["bg2"] = linear(keys[6], K, K)
    p["wg3"], p["bg3"] = linear(keys[7], K, K)
    p["wg4"], p["bg4"] = linear(keys[8], K, K)
    p["wd1"], p["bd1"] = linear(keys[9], K, V)
    # rep1 / l1_strength are not used in forward(); omitted.
    return p


def _ntm_forward_impl(x, eps, params):
    B, V = x.shape
    H = params["w12"].shape[0]
    K = params["w21"].shape[1]
    bf16, f32 = jnp.bfloat16, jnp.float32

    # ---- lane-aligned padding of the feature dims ----
    Hp = _round_up(H, 128)
    Kp = _round_up(K, 128)

    # Batch tiling: outer "parallel" axis; tb capped at 256 for v7x VMEM budget.
    Bp = _round_up(B, 8)
    if Bp <= 256:
        tb = Bp
    else:
        tb = 256
        Bp = _round_up(B, tb)
    nb = Bp // tb

    # Vocab tiling: the streaming / reduction axis (512-wide to fill the MXU).
    if V <= 512:
        tv = _round_up(V, 128)
        Vp = tv
    else:
        tv = 512
        Vp = _round_up(V, tv)
    nv = Vp // tv

    # ---- fuse + pad + cast parameters (bf16 weights, f32 biases) ----
    w_enc = jnp.concatenate(
        [_pad2(params["w11"], Vp, Hp), _pad2(params["ws"], Vp, Hp)], axis=1
    ).astype(bf16)                                                     # (Vp, 2Hp)
    w12 = _pad2(params["w12"], Hp, Hp).astype(bf16)
    w2122 = jnp.concatenate(
        [_pad2(params["w21"], Hp, Kp), _pad2(params["w22"], Hp, Kp)], axis=1
    ).astype(bf16)                                                     # (Hp, 2Kp)
    b11 = _pad2(params["b11"], 1, Hp).astype(f32)
    b12 = _pad2(params["b12"], 1, Hp).astype(f32)
    b2122 = jnp.concatenate(
        [_pad2(params["b21"], 1, Kp), _pad2(params["b22"], 1, Kp)], axis=1
    ).astype(f32)
    wgs = [(_pad2(params[f"wg{i}"], Kp, Kp).astype(bf16),
            _pad2(params[f"bg{i}"], 1, Kp).astype(f32)) for i in (1, 2, 3, 4)]
    wd1 = _pad2(params["wd1"], Kp, Vp).astype(bf16)                    # (Kp, Vp)
    bd1 = _pad2(params["bd1"], 1, Vp).astype(f32)

    x_p = _pad2(x, Bp, Vp).astype(bf16)      # BoW counts are exact in bf16
    eps_p = _pad2(eps, Bp, Kp).astype(f32)

    last_v = nv - 1

    def enc_v(p, v):   # hold the last encoder tile during the decoder phases
        return jnp.where(p == 0, v, last_v)

    def dec_v(p, v):   # hold decoder tile 0 during the encoder phase
        return jnp.where(p == 0, 0, v)

    in_specs = [
        pl.BlockSpec((tb, tv), lambda b, p, v: (b, enc_v(p, v))),        # x
        pl.BlockSpec((tb, Kp), lambda b, p, v: (b, 0)),                  # eps
        pl.BlockSpec((tv, 2 * Hp), lambda b, p, v: (enc_v(p, v), 0)),    # w_enc
        pl.BlockSpec((1, Hp), lambda b, p, v: (0, 0)),                   # b11
        pl.BlockSpec((Hp, Hp), lambda b, p, v: (0, 0)),                  # w12
        pl.BlockSpec((1, Hp), lambda b, p, v: (0, 0)),                   # b12
        pl.BlockSpec((Hp, 2 * Kp), lambda b, p, v: (0, 0)),              # w2122
        pl.BlockSpec((1, 2 * Kp), lambda b, p, v: (0, 0)),               # b2122
    ]
    for _ in range(4):                                                   # wg*, bg*
        in_specs += [pl.BlockSpec((Kp, Kp), lambda b, p, v: (0, 0)),
                     pl.BlockSpec((1, Kp), lambda b, p, v: (0, 0))]
    in_specs += [
        pl.BlockSpec((Kp, tv), lambda b, p, v: (0, dec_v(p, v))),        # wd1
        pl.BlockSpec((1, tv), lambda b, p, v: (0, dec_v(p, v))),         # bd1
    ]

    out_specs = [
        pl.BlockSpec((tb, 5 * Kp), lambda b, p, v: (b, 0)),                       # slab
        pl.BlockSpec((tb, tv), lambda b, p, v: (b, jnp.where(p == 2, v, 0))),     # dec
    ]
    out_shape = (
        jax.ShapeDtypeStruct((Bp, 5 * Kp), f32),
        jax.ShapeDtypeStruct((Bp, Vp), f32),
    )

    args = [x_p, eps_p, w_enc, b11, w12, b12, w2122, b2122]
    for w, b in wgs:
        args += [w, b]
    args += [wd1, bd1]

    # VMEM footprint estimate (2x for BlockSpec double buffering) + headroom.
    blk = 2 * (
        tb * tv * 2 + tb * Kp * 4 + tv * 2 * Hp * 2
        + 2 * Hp * 4 + Hp * Hp * 2 + Hp * 2 * Kp * 2 + 2 * Kp * 4
        + 4 * (Kp * Kp * 2 + Kp * 4)
        + Kp * tv * 2 + tv * 4
        + tb * 5 * Kp * 4 + tb * tv * 4
    )
    scratch = tb * 2 * Hp * 4 + tb * Kp * 2 + 2 * tb * 128 * 4
    vmem_limit = int(min(48 << 20, max(int((blk + scratch) * 1.5), 16 << 20)))

    flops = 2 * Bp * (Vp * 2 * Hp + Hp * Hp + Hp * 2 * Kp + 4 * Kp * Kp + 2 * Kp * Vp)
    transcendentals = Bp * (6 * Kp + 2 * Vp)
    bytes_accessed = (
        Bp * Vp * 2 + Bp * Kp * 4
        + (Vp * 2 * Hp + Hp * Hp + Hp * 2 * Kp + 4 * Kp * Kp) * 2
        + 2 * Kp * Vp * 2
        + (Bp * 5 * Kp + Bp * Vp) * 4
    )

    kernel = _make_kernel(Hp, Kp, K, V, tv)

    slab, dec = pl.pallas_call(
        kernel,
        out_shape=out_shape,
        grid_spec=pltpu.PrefetchScalarGridSpec(
            num_scalar_prefetch=0,
            grid=(nb, 3, nv),
            in_specs=in_specs,
            out_specs=out_specs,
            scratch_shapes=[
                pltpu.VMEM((tb, 2 * Hp), f32),    # encoder accumulator
                pltpu.VMEM((tb, Kp), bf16),       # g (decoder matmul input)
                pltpu.VMEM((tb, 1), f32),         # decoder running max
                pltpu.VMEM((tb, 1), f32),         # decoder running sum-exp -> 1/l
            ],
        ),
        compiler_params=pltpu.CompilerParams(
            dimension_semantics=("parallel", "arbitrary", "arbitrary"),
            vmem_limit_bytes=vmem_limit,
        ),
        cost_estimate=pl.CostEstimate(
            flops=flops,
            transcendentals=transcendentals,
            bytes_accessed=bytes_accessed,
        ),
    )(*args)

    mu = slab[:B, 0:K]
    logvar = slab[:B, Kp:Kp + K]
    z = slab[:B, 2 * Kp:2 * Kp + K]
    theta = slab[:B, 3 * Kp:3 * Kp + K]
    g = slab[:B, 4 * Kp:4 * Kp + K]
    dec = dec[:B, :V]
    # Same output order as the torch forward: (z, g, decode(g), mu, logvar, theta)
    return z, g, dec, mu, logvar, theta


ntm_forward = jax.jit(_ntm_forward_impl)


def ntm_reference(x, eps, p):
    """Pure-JAX reference matching the torch forward (bf16 matmuls, f32 accum)."""
    bf16 = jnp.bfloat16

    def mm(a, w):
        return jnp.dot(a.astype(bf16), w.astype(bf16),
                       preferred_element_type=jnp.float32)

    e1 = jax.nn.relu(mm(x, p["w11"]) + p["b11"])
    e1 = jax.nn.relu(mm(e1, p["w12"]) + p["b12"])
    e1 = e1 + mm(x, p["ws"])
    mu = mm(e1, p["w21"]) + p["b21"]
    logvar = mm(e1, p["w22"]) + p["b22"]
    z = eps * jnp.exp(0.5 * logvar) + mu
    theta = jax.nn.softmax(z, axis=-1)
    g = jnp.tanh(mm(z, p["wg1"]) + p["bg1"])
    g = jnp.tanh(mm(g, p["wg2"]) + p["bg2"])
    g = jnp.tanh(mm(g, p["wg3"]) + p["bg3"])
    g = jnp.tanh(mm(g, p["wg4"]) + p["bg4"])
    g = g + z
    dec = jax.nn.softmax(mm(g, p["wd1"]) + p["bd1"], axis=1)
    return z, g, dec, mu, logvar, theta


if __name__ == "__main__":
    # Small shapes that exercise every padding path:
    #   B=10 -> Bp=16, V=1000 -> Vp=1024 (nv=2, masked last tile),
    #   H=100 -> Hp=128, K=20 -> Kp=128.
    B, V, H, K = 10, 1000, 100, 20

    root = jax.random.PRNGKey(0)
    k_x, k_eps, k_params = jax.random.split(root, 3)

    # Non-negative bag-of-words-like counts.
    x = jax.random.poisson(k_x, 0.3, (B, V)).astype(jnp.float32)
    # TODO(synk): torch uses torch.randn_like inside reparameterize; the noise is
    # generated here deterministically and passed in instead.
    eps = jax.random.normal(k_eps, (B, K), jnp.float32)
    params = init_ntm_params(k_params, V, K, H)

    outs = jax.block_until_ready(ntm_forward(x, eps, params))
    refs = ntm_reference(x, eps, params)

    names = ("z", "g", "dec", "mu", "logvar", "theta")
    for name, o, r in zip(names, outs, refs):
        assert o.shape == r.shape and o.dtype == r.dtype, name
        # bf16 matmuls (f32 accumulation) -> relaxed tolerance.
        assert jnp.allclose(o, r, atol=2e-2, rtol=2e-2), f"mismatch vs reference: {name}"

    print("KERNEL_OK")
</pallas_src>

<mosaic_0001>
module attributes {stable_mosaic.version = 11 : i64} {
  func.func @kernel(%arg0: i32, %arg1: i32, %arg2: i32, %arg3: memref<16x512xbf16, #tpu.memory_space<vmem>>, %arg4: memref<16x128xf32, #tpu.memory_space<vmem>>, %arg5: memref<512x256xbf16, #tpu.memory_space<vmem>>, %arg6: memref<1x128xf32, #tpu.memory_space<vmem>>, %arg7: memref<128x128xbf16, #tpu.memory_space<vmem>>, %arg8: memref<1x128xf32, #tpu.memory_space<vmem>>, %arg9: memref<128x256xbf16, #tpu.memory_space<vmem>>, %arg10: memref<1x256xf32, #tpu.memory_space<vmem>>, %arg11: memref<128x128xbf16, #tpu.memory_space<vmem>>, %arg12: memref<1x128xf32, #tpu.memory_space<vmem>>, %arg13: memref<128x128xbf16, #tpu.memory_space<vmem>>, %arg14: memref<1x128xf32, #tpu.memory_space<vmem>>, %arg15: memref<128x128xbf16, #tpu.memory_space<vmem>>, %arg16: memref<1x128xf32, #tpu.memory_space<vmem>>, %arg17: memref<128x128xbf16, #tpu.memory_space<vmem>>, %arg18: memref<1x128xf32, #tpu.memory_space<vmem>>, %arg19: memref<128x512xbf16, #tpu.memory_space<vmem>>, %arg20: memref<1x512xf32, #tpu.memory_space<vmem>>, %arg21: memref<16x640xf32, #tpu.memory_space<vmem>>, %arg22: memref<16x512xf32, #tpu.memory_space<vmem>>, %arg23: memref<16x256xf32, #tpu.memory_space<vmem>>, %arg24: memref<16x128xbf16, #tpu.memory_space<vmem>>, %arg25: memref<16x1xf32, #tpu.memory_space<vmem>>, %arg26: memref<16x1xf32, #tpu.memory_space<vmem>>) attributes {dimension_semantics = [#tpu.dimension_semantics<parallel>, #tpu.dimension_semantics<arbitrary>, #tpu.dimension_semantics<arbitrary>], iteration_bounds = array<i64: 1, 3, 2>, scalar_prefetch = 0 : i64, scratch_operands = 4 : i64, tpu.core_type = #tpu.core_type<tc>, window_params = [{transform_indices = @transform_0, window_bounds = array<i64: 16, 512>}, {transform_indices = @transform_1, window_bounds = array<i64: 16, 128>}, {transform_indices = @transform_2, window_bounds = array<i64: 512, 256>}, {pipeline_mode = #tpu.pipeline_mode<synchronous>, transform_indices = @transform_3, window_bounds = array<i64: 1, 128>}, {pipeline_mode = #tpu.pipeline_mode<synchronous>, transform_indices = @transform_4, window_bounds = array<i64: 128, 128>}, {pipeline_mode = #tpu.pipeline_mode<synchronous>, transform_indices = @transform_5, window_bounds = array<i64: 1, 128>}, {pipeline_mode = #tpu.pipeline_mode<synchronous>, transform_indices = @transform_6, window_bounds = array<i64: 128, 256>}, {pipeline_mode = #tpu.pipeline_mode<synchronous>, transform_indices = @transform_7, window_bounds = array<i64: 1, 256>}, {pipeline_mode = #tpu.pipeline_mode<synchronous>, transform_indices = @transform_8, window_bounds = array<i64: 128, 128>}, {pipeline_mode = #tpu.pipeline_mode<synchronous>, transform_indices = @transform_9, window_bounds = array<i64: 1, 128>}, {pipeline_mode = #tpu.pipeline_mode<synchronous>, transform_indices = @transform_10, window_bounds = array<i64: 128, 128>}, {pipeline_mode = #tpu.pipeline_mode<synchronous>, transform_indices = @transform_11, window_bounds = array<i64: 1, 128>}, {pipeline_mode = #tpu.pipeline_mode<synchronous>, transform_indices = @transform_12, window_bounds = array<i64: 128, 128>}, {pipeline_mode = #tpu.pipeline_mode<synchronous>, transform_indices = @transform_13, window_bounds = array<i64: 1, 128>}, {pipeline_mode = #tpu.pipeline_mode<synchronous>, transform_indices = @transform_14, window_bounds = array<i64: 128, 128>}, {pipeline_mode = #tpu.pipeline_mode<synchronous>, transform_indices = @transform_15, window_bounds = array<i64: 1, 128>}, {transform_indices = @transform_16, window_bounds = array<i64: 128, 512>}, {transform_indices = @transform_17, window_bounds = array<i64: 1, 512>}, {transform_indices = @transform_18, window_bounds = array<i64: 16, 640>}, {transform_indices = @transform_19, window_bounds = array<i64: 16, 512>}]} {
    %c0_i32 = arith.constant 0 : i32
    %0 = arith.cmpi eq, %arg1, %c0_i32 : i32
    %1 = arith.extui %0 : i1 to i32
    %c0_i32_0 = arith.constant 0 : i32
    %2 = arith.cmpi ne, %1, %c0_i32_0 : i32
    scf.if %2 {
      %c0_i32_3 = arith.constant 0 : i32
      %9 = arith.cmpi eq, %arg2, %c0_i32_3 : i32
      %10 = arith.extui %9 : i1 to i32
      %c0_i32_4 = arith.constant 0 : i32
      %11 = arith.cmpi ne, %10, %c0_i32_4 : i32
      scf.if %11 {
        %cst_14 = arith.constant 0.000000e+00 : f32
        %21 = vector.broadcast %cst_14 : f32 to vector<16x256xf32>
        %c0_15 = arith.constant 0 : index
        %c0_16 = arith.constant 0 : index
        %22 = vector.load %arg23[%c0_15, %c0_16] : memref<16x256xf32, #tpu.memory_space<vmem>>, vector<16x256xf32>
        tpu.vector_store %arg23[%c0_15, %c0_16], %21 {strides = array<i32>} : memref<16x256xf32, #tpu.memory_space<vmem>>, vector<16x256xf32>,
      } else {
      }
      %c0 = arith.constant 0 : index
      %c0_5 = arith.constant 0 : index
      %12 = vector.load %arg23[%c0, %c0_5] : memref<16x256xf32, #tpu.memory_space<vmem>>, vector<16x256xf32>
      %c0_6 = arith.constant 0 : index
      %c0_7 = arith.constant 0 : index
      %13 = vector.load %arg3[%c0_6, %c0_7] : memref<16x512xbf16, #tpu.memory_space<vmem>>, vector<16x512xbf16>
      %c0_8 = arith.constant 0 : index
      %c0_9 = arith.constant 0 : index
      %14 = vector.load %arg5[%c0_8, %c0_9] : memref<512x256xbf16, #tpu.memory_space<vmem>>, vector<512x256xbf16>
      %cst = arith.constant dense<0.000000e+00> : vector<16x256xf32>
      %15 = tpu.matmul %13, %14, %cst {dimension_numbers = #tpu.dot_dimension_numbers<[1], [0], [0], [1], [0, 0, 1, 1], [], []>} : vector<16x512xbf16>, vector<512x256xbf16>, vector<16x256xf32> -> vector<16x256xf32>
      %16 = arith.addf %12, %15 : vector<16x256xf32>
      %c0_10 = arith.constant 0 : index
      %c0_11 = arith.constant 0 : index
      %17 = vector.load %arg23[%c0_10, %c0_11] : memref<16x256xf32, #tpu.memory_space<vmem>>, vector<16x256xf32>
      tpu.vector_store %arg23[%c0_10, %c0_11], %16 {strides = array<i32>} : memref<16x256xf32, #tpu.memory_space<vmem>>, vector<16x256xf32>,
      %c1_i32_12 = arith.constant 1 : i32
      %18 = arith.cmpi eq, %arg2, %c1_i32_12 : i32
      %19 = arith.extui %18 : i1 to i32
      %c0_i32_13 = arith.constant 0 : i32
      %20 = arith.cmpi ne, %19, %c0_i32_13 : i32
      scf.if %20 {
        %c0_14 = arith.constant 0 : index
        %c0_15 = arith.constant 0 : index
        %21 = vector.load %arg23[%c0_14, %c0_15] : memref<16x256xf32, #tpu.memory_space<vmem>>, vector<16x256xf32>
        %22 = vector.extract_strided_slice %21 {offsets = [0, 0], sizes = [16, 128], strides = [1, 1]} : vector<16x256xf32> to vector<16x128xf32>
        %23 = vector.extract_strided_slice %21 {offsets = [0, 128], sizes = [16, 128], strides = [1, 1]} : vector<16x256xf32> to vector<16x128xf32>
        %c0_16 = arith.constant 0 : index
        %c0_17 = arith.constant 0 : index
        %24 = vector.load %arg6[%c0_16, %c0_17] : memref<1x128xf32, #tpu.memory_space<vmem>>, vector<1x128xf32>
        %25 = vector.broadcast %24 : vector<1x128xf32> to vector<16x128xf32>
        %26 = arith.addf %22, %25 : vector<16x128xf32>
        %cst_18 = arith.constant 0.000000e+00 : f32
        %27 = vector.broadcast %cst_18 : f32 to vector<16x128xf32>
        %28 = arith.maximumf %26, %27 : vector<16x128xf32>
        %29 = arith.truncf %28 : vector<16x128xf32> to vector<16x128xbf16>
        %c0_19 = arith.constant 0 : index
        %c0_20 = arith.constant 0 : index
        %30 = vector.load %arg7[%c0_19, %c0_20] : memref<128x128xbf16, #tpu.memory_space<vmem>>, vector<128x128xbf16>
        %cst_21 = arith.constant dense<0.000000e+00> : vector<16x128xf32>
        %31 = tpu.matmul %29, %30, %cst_21 {dimension_numbers = #tpu.dot_dimension_numbers<[1], [0], [0], [1], [0, 0, 1, 1], [], []>} : vector<16x128xbf16>, vector<128x128xbf16>, vector<16x128xf32> -> vector<16x128xf32>
        %c0_22 = arith.constant 0 : index
        %c0_23 = arith.constant 0 : index
        %32 = vector.load %arg8[%c0_22, %c0_23] : memref<1x128xf32, #tpu.memory_space<vmem>>, vector<1x128xf32>
        %33 = vector.broadcast %32 : vector<1x128xf32> to vector<16x128xf32>
        %34 = arith.addf %31, %33 : vector<16x128xf32>
        %cst_24 = arith.constant 0.000000e+00 : f32
        %35 = vector.broadcast %cst_24 : f32 to vector<16x128xf32>
        %36 = arith.maximumf %34, %35 : vector<16x128xf32>
        %37 = arith.addf %36, %23 : vector<16x128xf32>
        %38 = arith.truncf %37 : vector<16x128xf32> to vector<16x128xbf16>
        %c0_25 = arith.constant 0 : index
        %c0_26 = arith.constant 0 : index
        %39 = vector.load %arg9[%c0_25, %c0_26] : memref<128x256xbf16, #tpu.memory_space<vmem>>, vector<128x256xbf16>
        %cst_27 = arith.constant dense<0.000000e+00> : vector<16x256xf32>
        %40 = tpu.matmul %38, %39, %cst_27 {dimension_numbers = #tpu.dot_dimension_numbers<[1], [0], [0], [1], [0, 0, 1, 1], [], []>} : vector<16x128xbf16>, vector<128x256xbf16>, vector<16x256xf32> -> vector<16x256xf32>
        %c0_28 = arith.constant 0 : index
        %c0_29 = arith.constant 0 : index
        %41 = vector.load %arg10[%c0_28, %c0_29] : memref<1x256xf32, #tpu.memory_space<vmem>>, vector<1x256xf32>
        %42 = vector.broadcast %41 : vector<1x256xf32> to vector<16x256xf32>
        %43 = arith.addf %40, %42 : vector<16x256xf32>
        %44 = vector.extract_strided_slice %43 {offsets = [0, 0], sizes = [16, 128], strides = [1, 1]} : vector<16x256xf32> to vector<16x128xf32>
        %45 = vector.extract_strided_slice %43 {offsets = [0, 128], sizes = [16, 128], strides = [1, 1]} : vector<16x256xf32> to vector<16x128xf32>
        %cst_30 = arith.constant 5.000000e-01 : f32
        %46 = vector.broadcast %cst_30 : f32 to vector<16x128xf32>
        %47 = arith.mulf %46, %45 : vector<16x128xf32>
        %48 = math.exp %47 : vector<16x128xf32>
        %c0_31 = arith.constant 0 : index
        %c0_32 = arith.constant 0 : index
        %49 = vector.load %arg4[%c0_31, %c0_32] : memref<16x128xf32, #tpu.memory_space<vmem>>, vector<16x128xf32>
        %50 = arith.mulf %49, %48 : vector<16x128xf32>
        %51 = arith.addf %50, %44 : vector<16x128xf32>
        %52 = tpu.iota {dimensions = array<i32: 1>} : vector<16x128xi32>
        %c20_i32 = arith.constant 20 : i32
        %53 = vector.broadcast %c20_i32 : i32 to vector<16x128xi32>
        %54 = arith.cmpi slt, %52, %53 : vector<16x128xi32>
        %cst_33 = arith.constant -1.000000e+30 : f32
        %55 = vector.broadcast %cst_33 : f32 to vector<16x128xf32>
        %56 = arith.select %54, %51, %55 : vector<16x128xi1>, vector<16x128xf32>
        %cst_34 = arith.constant dense<0xFF800000> : vector<16xf32>
        %57 = vector.multi_reduction <maximumf>, %56, %cst_34 [1] : vector<16x128xf32> to vector<16xf32>
        %58 = vector.shape_cast %57 : vector<16xf32> to vector<16x1xf32>
        %59 = vector.broadcast %58 : vector<16x1xf32> to vector<16x128xf32>
        %60 = arith.subf %56, %59 : vector<16x128xf32>
        %61 = math.exp %60 : vector<16x128xf32>
        %cst_35 = arith.constant dense<0.000000e+00> : vector<16xf32>
        %62 = vector.multi_reduction <add>, %61, %cst_35 [1] : vector<16x128xf32> to vector<16xf32>
        %63 = vector.shape_cast %62 : vector<16xf32> to vector<16x1xf32>
        %64 = vector.broadcast %63 : vector<16x1xf32> to vector<16x128xf32>
        %65 = arith.divf %61, %64 : vector<16x128xf32>
        %66 = arith.truncf %51 : vector<16x128xf32> to vector<16x128xbf16>
        %c0_36 = arith.constant 0 : index
        %c0_37 = arith.constant 0 : index
        %67 = vector.load %arg11[%c0_36, %c0_37] : memref<128x128xbf16, #tpu.memory_space<vmem>>, vector<128x128xbf16>
        %cst_38 = arith.constant dense<0.000000e+00> : vector<16x128xf32>
        %68 = tpu.matmul %66, %67, %cst_38 {dimension_numbers = #tpu.dot_dimension_numbers<[1], [0], [0], [1], [0, 0, 1, 1], [], []>} : vector<16x128xbf16>, vector<128x128xbf16>, vector<16x128xf32> -> vector<16x128xf32>
        %c0_39 = arith.constant 0 : index
        %c0_40 = arith.constant 0 : index
        %69 = vector.load %arg12[%c0_39, %c0_40] : memref<1x128xf32, #tpu.memory_space<vmem>>, vector<1x128xf32>
        %70 = vector.broadcast %69 : vector<1x128xf32> to vector<16x128xf32>
        %71 = arith.addf %68, %70 : vector<16x128xf32>
        %72 = math.tanh %71 : vector<16x128xf32>
        %73 = arith.truncf %72 : vector<16x128xf32> to vector<16x128xbf16>
        %c0_41 = arith.constant 0 : index
        %c0_42 = arith.constant 0 : index
        %74 = vector.load %arg13[%c0_41, %c0_42] : memref<128x128xbf16, #tpu.memory_space<vmem>>, vector<128x128xbf16>
        %cst_43 = arith.constant dense<0.000000e+00> : vector<16x128xf32>
        %75 = tpu.matmul %73, %74, %cst_43 {dimension_numbers = #tpu.dot_dimension_numbers<[1], [0], [0], [1], [0, 0, 1, 1], [], []>} : vector<16x128xbf16>, vector<128x128xbf16>, vector<16x128xf32> -> vector<16x128xf32>
        %c0_44 = arith.constant 0 : index
        %c0_45 = arith.constant 0 : index
        %76 = vector.load %arg14[%c0_44, %c0_45] : memref<1x128xf32, #tpu.memory_space<vmem>>, vector<1x128xf32>
        %77 = vector.broadcast %76 : vector<1x128xf32> to vector<16x128xf32>
        %78 = arith.addf %75, %77 : vector<16x128xf32>
        %79 = math.tanh %78 : vector<16x128xf32>
        %80 = arith.truncf %79 : vector<16x128xf32> to vector<16x128xbf16>
        %c0_46 = arith.constant 0 : index
        %c0_47 = arith.constant 0 : index
        %81 = vector.load %arg15[%c0_46, %c0_47] : memref<128x128xbf16, #tpu.memory_space<vmem>>, vector<128x128xbf16>
        %cst_48 = arith.constant dense<0.000000e+00> : vector<16x128xf32>
        %82 = tpu.matmul %80, %81, %cst_48 {dimension_numbers = #tpu.dot_dimension_numbers<[1], [0], [0], [1], [0, 0, 1, 1], [], []>} : vector<16x128xbf16>, vector<128x128xbf16>, vector<16x128xf32> -> vector<16x128xf32>
        %c0_49 = arith.constant 0 : index
        %c0_50 = arith.constant 0 : index
        %83 = vector.load %arg16[%c0_49, %c0_50] : memref<1x128xf32, #tpu.memory_space<vmem>>, vector<1x128xf32>
        %84 = vector.broadcast %83 : vector<1x128xf32> to vector<16x128xf32>
        %85 = arith.addf %82, %84 : vector<16x128xf32>
        %86 = math.tanh %85 : vector<16x128xf32>
        %87 = arith.truncf %86 : vector<16x128xf32> to vector<16x128xbf16>
        %c0_51 = arith.constant 0 : index
        %c0_52 = arith.constant 0 : index
        %88 = vector.load %arg17[%c0_51, %c0_52] : memref<128x128xbf16, #tpu.memory_space<vmem>>, vector<128x128xbf16>
        %cst_53 = arith.constant dense<0.000000e+00> : vector<16x128xf32>
        %89 = tpu.matmul %87, %88, %cst_53 {dimension_numbers = #tpu.dot_dimension_numbers<[1], [0], [0], [1], [0, 0, 1, 1], [], []>} : vector<16x128xbf16>, vector<128x128xbf16>, vector<16x128xf32> -> vector<16x128xf32>
        %c0_54 = arith.constant 0 : index
        %c0_55 = arith.constant 0 : index
        %90 = vector.load %arg18[%c0_54, %c0_55] : memref<1x128xf32, #tpu.memory_space<vmem>>, vector<1x128xf32>
        %91 = vector.broadcast %90 : vector<1x128xf32> to vector<16x128xf32>
        %92 = arith.addf %89, %91 : vector<16x128xf32>
        %93 = math.tanh %92 : vector<16x128xf32>
        %94 = arith.addf %93, %51 : vector<16x128xf32>
        %95 = arith.truncf %94 : vector<16x128xf32> to vector<16x128xbf16>
        %c0_56 = arith.constant 0 : index
        %c0_57 = arith.constant 0 : index
        %96 = vector.load %arg24[%c0_56, %c0_57] : memref<16x128xbf16, #tpu.memory_space<vmem>>, vector<16x128xbf16>
        tpu.vector_store %arg24[%c0_56, %c0_57], %95 {strides = array<i32>} : memref<16x128xbf16, #tpu.memory_space<vmem>>, vector<16x128xbf16>,
        %97 = tpu.concatenate %44, %45, %51, %65, %94 in 1 : vector<16x128xf32>, vector<16x128xf32>, vector<16x128xf32>, vector<16x128xf32>, vector<16x128xf32> -> vector<16x640xf32>
        %c0_58 = arith.constant 0 : index
        %c0_59 = arith.constant 0 : index
        %98 = vector.load %arg21[%c0_58, %c0_59] : memref<16x640xf32, #tpu.memory_space<vmem>>, vector<16x640xf32>
        tpu.vector_store %arg21[%c0_58, %c0_59], %97 {strides = array<i32>} : memref<16x640xf32, #tpu.memory_space<vmem>>, vector<16x640xf32>,
      } else {
      }
    } else {
    }
    %c1_i32 = arith.constant 1 : i32
    %3 = arith.cmpi eq, %arg1, %c1_i32 : i32
    %4 = arith.extui %3 : i1 to i32
    %c0_i32_1 = arith.constant 0 : i32
    %5 = arith.cmpi ne, %4, %c0_i32_1 : i32
    scf.if %5 {
      %c0_i32_3 = arith.constant 0 : i32
      %9 = arith.cmpi eq, %arg2, %c0_i32_3 : i32
      %10 = arith.extui %9 : i1 to i32
      %c0_i32_4 = arith.constant 0 : i32
      %11 = arith.cmpi ne, %10, %c0_i32_4 : i32
      scf.if %11 {
        %cst_23 = arith.constant 0xFF800000 : f32
        %45 = vector.broadcast %cst_23 : f32 to vector<16x1xf32>
        %c0_24 = arith.constant 0 : index
        %c0_25 = arith.constant 0 : index
        %46 = vector.load %arg25[%c0_24, %c0_25] : memref<16x1xf32, #tpu.memory_space<vmem>>, vector<16x1xf32>
        tpu.vector_store %arg25[%c0_24, %c0_25], %45 {strides = array<i32>} : memref<16x1xf32, #tpu.memory_space<vmem>>, vector<16x1xf32>,
        %cst_26 = arith.constant 0.000000e+00 : f32
        %47 = vector.broadcast %cst_26 : f32 to vector<16x1xf32>
        %c0_27 = arith.constant 0 : index
        %c0_28 = arith.constant 0 : index
        %48 = vector.load %arg26[%c0_27, %c0_28] : memref<16x1xf32, #tpu.memory_space<vmem>>, vector<16x1xf32>
        tpu.vector_store %arg26[%c0_27, %c0_28], %47 {strides = array<i32>} : memref<16x1xf32, #tpu.memory_space<vmem>>, vector<16x1xf32>,
      } else {
      }
      %c0 = arith.constant 0 : index
      %c0_5 = arith.constant 0 : index
      %12 = vector.load %arg24[%c0, %c0_5] : memref<16x128xbf16, #tpu.memory_space<vmem>>, vector<16x128xbf16>
      %c0_6 = arith.constant 0 : index
      %c0_7 = arith.constant 0 : index
      %13 = vector.load %arg19[%c0_6, %c0_7] : memref<128x512xbf16, #tpu.memory_space<vmem>>, vector<128x512xbf16>
      %cst = arith.constant dense<0.000000e+00> : vector<16x512xf32>
      %14 = tpu.matmul %12, %13, %cst {dimension_numbers = #tpu.dot_dimension_numbers<[1], [0], [0], [1], [0, 0, 1, 1], [], []>} : vector<16x128xbf16>, vector<128x512xbf16>, vector<16x512xf32> -> vector<16x512xf32>
      %c0_8 = arith.constant 0 : index
      %c0_9 = arith.constant 0 : index
      %15 = vector.load %arg20[%c0_8, %c0_9] : memref<1x512xf32, #tpu.memory_space<vmem>>, vector<1x512xf32>
      %16 = vector.broadcast %15 : vector<1x512xf32> to vector<16x512xf32>
      %17 = arith.addf %14, %16 : vector<16x512xf32>
      %18 = tpu.iota {dimensions = array<i32: 1>} : vector<16x512xi32>
      %c512_i32 = arith.constant 512 : i32
      %19 = arith.muli %arg2, %c512_i32 : i32
      %20 = vector.broadcast %19 : i32 to vector<16x512xi32>
      %21 = arith.addi %18, %20 : vector<16x512xi32>
      %c1000_i32 = arith.constant 1000 : i32
      %22 = vector.broadcast %c1000_i32 : i32 to vector<16x512xi32>
      %23 = arith.cmpi slt, %21, %22 : vector<16x512xi32>
      %cst_10 = arith.constant -1.000000e+30 : f32
      %24 = vector.broadcast %cst_10 : f32 to vector<16x512xf32>
      %25 = arith.select %23, %17, %24 : vector<16x512xi1>, vector<16x512xf32>
      %c0_11 = arith.constant 0 : index
      %c0_12 = arith.constant 0 : index
      %26 = vector.load %arg25[%c0_11, %c0_12] : memref<16x1xf32, #tpu.memory_space<vmem>>, vector<16x1xf32>
      %cst_13 = arith.constant dense<0xFF800000> : vector<16xf32>
      %27 = vector.multi_reduction <maximumf>, %25, %cst_13 [1] : vector<16x512xf32> to vector<16xf32>
      %28 = vector.shape_cast %27 : vector<16xf32> to vector<16x1xf32>
      %29 = arith.maximumf %26, %28 : vector<16x1xf32>
      %c0_14 = arith.constant 0 : index
      %c0_15 = arith.constant 0 : index
      %30 = vector.load %arg26[%c0_14, %c0_15] : memref<16x1xf32, #tpu.memory_space<vmem>>, vector<16x1xf32>
      %31 = arith.subf %26, %29 : vector<16x1xf32>
      %32 = math.exp %31 : vector<16x1xf32>
      %33 = arith.mulf %30, %32 : vector<16x1xf32>
      %34 = vector.broadcast %29 : vector<16x1xf32> to vector<16x512xf32>
      %35 = arith.subf %25, %34 : vector<16x512xf32>
      %36 = math.exp %35 : vector<16x512xf32>
      %cst_16 = arith.constant dense<0.000000e+00> : vector<16xf32>
      %37 = vector.multi_reduction <add>, %36, %cst_16 [1] : vector<16x512xf32> to vector<16xf32>
      %38 = vector.shape_cast %37 : vector<16xf32> to vector<16x1xf32>
      %39 = arith.addf %33, %38 : vector<16x1xf32>
      %c0_17 = arith.constant 0 : index
      %c0_18 = arith.constant 0 : index
      %40 = vector.load %arg26[%c0_17, %c0_18] : memref<16x1xf32, #tpu.memory_space<vmem>>, vector<16x1xf32>
      tpu.vector_store %arg26[%c0_17, %c0_18], %39 {strides = array<i32>} : memref<16x1xf32, #tpu.memory_space<vmem>>, vector<16x1xf32>,
      %c0_19 = arith.constant 0 : index
      %c0_20 = arith.constant 0 : index
      %41 = vector.load %arg25[%c0_19, %c0_20] : memref<16x1xf32, #tpu.memory_space<vmem>>, vector<16x1xf32>
      tpu.vector_store %arg25[%c0_19, %c0_20], %29 {strides = array<i32>} : memref<16x1xf32, #tpu.memory_space<vmem>>, vector<16x1xf32>,
      %c1_i32_21 = arith.constant 1 : i32
      %42 = arith.cmpi eq, %arg2, %c1_i32_21 : i32
      %43 = arith.extui %42 : i1 to i32
      %c0_i32_22 = arith.constant 0 : i32
      %44 = arith.cmpi ne, %43, %c0_i32_22 : i32
      scf.if %44 {
        %c0_23 = arith.constant 0 : index
        %c0_24 = arith.constant 0 : index
        %45 = vector.load %arg26[%c0_23, %c0_24] : memref<16x1xf32, #tpu.memory_space<vmem>>, vector<16x1xf32>
        %cst_25 = arith.constant 1.000000e+00 : f32
        %46 = vector.broadcast %cst_25 : f32 to vector<16x1xf32>
        %47 = arith.divf %46, %45 : vector<16x1xf32>
        %c0_26 = arith.constant 0 : index
        %c0_27 = arith.constant 0 : index
        %48 = vector.load %arg26[%c0_26, %c0_27] : memref<16x1xf32, #tpu.memory_space<vmem>>, vector<16x1xf32>
        tpu.vector_store %arg26[%c0_26, %c0_27], %47 {strides = array<i32>} : memref<16x1xf32, #tpu.memory_space<vmem>>, vector<16x1xf32>,
      } else {
      }
    } else {
    }
    %c2_i32 = arith.constant 2 : i32
    %6 = arith.cmpi eq, %arg1, %c2_i32 : i32
    %7 = arith.extui %6 : i1 to i32
    %c0_i32_2 = arith.constant 0 : i32
    %8 = arith.cmpi ne, %7, %c0_i32_2 : i32
    scf.if %8 {
      %c0 = arith.constant 0 : index
      %c0_3 = arith.constant 0 : index
      %9 = vector.load %arg24[%c0, %c0_3] : memref<16x128xbf16, #tpu.memory_space<vmem>>, vector<16x128xbf16>
      %c0_4 = arith.constant 0 : index
      %c0_5 = arith.constant 0 : index
      %10 = vector.load %arg19[%c0_4, %c0_5] : memref<128x512xbf16, #tpu.memory_space<vmem>>, vector<128x512xbf16>
      %cst = arith.constant dense<0.000000e+00> : vector<16x512xf32>
      %11 = tpu.matmul %9, %10, %cst {dimension_numbers = #tpu.dot_dimension_numbers<[1], [0], [0], [1], [0, 0, 1, 1], [], []>} : vector<16x128xbf16>, vector<128x512xbf16>, vector<16x512xf32> -> vector<16x512xf32>
      %c0_6 = arith.constant 0 : index
      %c0_7 = arith.constant 0 : index
      %12 = vector.load %arg20[%c0_6, %c0_7] : memref<1x512xf32, #tpu.memory_space<vmem>>, vector<1x512xf32>
      %13 = vector.broadcast %12 : vector<1x512xf32> to vector<16x512xf32>
      %14 = arith.addf %11, %13 : vector<16x512xf32>
      %15 = tpu.iota {dimensions = array<i32: 1>} : vector<16x512xi32>
      %c512_i32 = arith.constant 512 : i32
      %16 = arith.muli %arg2, %c512_i32 : i32
      %17 = vector.broadcast %16 : i32 to vector<16x512xi32>
      %18 = arith.addi %15, %17 : vector<16x512xi32>
      %c1000_i32 = arith.constant 1000 : i32
      %19 = vector.broadcast %c1000_i32 : i32 to vector<16x512xi32>
      %20 = arith.cmpi slt, %18, %19 : vector<16x512xi32>
      %cst_8 = arith.constant -1.000000e+30 : f32
      %21 = vector.broadcast %cst_8 : f32 to vector<16x512xf32>
      %22 = arith.select %20, %14, %21 : vector<16x512xi1>, vector<16x512xf32>
      %c0_9 = arith.constant 0 : index
      %c0_10 = arith.constant 0 : index
      %23 = vector.load %arg25[%c0_9, %c0_10] : memref<16x1xf32, #tpu.memory_space<vmem>>, vector<16x1xf32>
      %24 = vector.broadcast %23 : vector<16x1xf32> to vector<16x512xf32>
      %25 = arith.subf %22, %24 : vector<16x512xf32>
      %26 = math.exp %25 : vector<16x512xf32>
      %c0_11 = arith.constant 0 : index
      %c0_12 = arith.constant 0 : index
      %27 = vector.load %arg26[%c0_11, %c0_12] : memref<16x1xf32, #tpu.memory_space<vmem>>, vector<16x1xf32>
      %28 = vector.broadcast %27 : vector<16x1xf32> to vector<16x512xf32>
      %29 = arith.mulf %26, %28 : vector<16x512xf32>
      %c0_13 = arith.constant 0 : index
      %c0_14 = arith.constant 0 : index
      %30 = vector.load %arg22[%c0_13, %c0_14] : memref<16x512xf32, #tpu.memory_space<vmem>>, vector<16x512xf32>
      tpu.vector_store %arg22[%c0_13, %c0_14], %29 {strides = array<i32>} : memref<16x512xf32, #tpu.memory_space<vmem>>, vector<16x512xf32>,
    } else {
    }
    return
  }
  func.func @transform_0(%arg0: i32, %arg1: i32, %arg2: i32) -> (i32, i32) {
    %c0_i32 = arith.constant 0 : i32
    %0 = arith.cmpi eq, %arg1, %c0_i32 : i32
    %c1_i32 = arith.constant 1 : i32
    %1 = arith.select %0, %arg2, %c1_i32 : i32
    %c0_i32_0 = arith.constant 0 : i32
    return %arg0, %1 : i32, i32
  }
  func.func @transform_1(%arg0: i32, %arg1: i32, %arg2: i32) -> (i32, i32) {
    %c0_i32 = arith.constant 0 : i32
    %c0_i32_0 = arith.constant 0 : i32
    return %arg0, %c0_i32 : i32, i32
  }
  func.func @transform_2(%arg0: i32, %arg1: i32, %arg2: i32) -> (i32, i32) {
    %c0_i32 = arith.constant 0 : i32
    %0 = arith.cmpi eq, %arg1, %c0_i32 : i32
    %c1_i32 = arith.constant 1 : i32
    %1 = arith.select %0, %arg2, %c1_i32 : i32
    %c0_i32_0 = arith.constant 0 : i32
    %c0_i32_1 = arith.constant 0 : i32
    return %1, %c0_i32_0 : i32, i32
  }
  func.func @transform_3(%arg0: i32, %arg1: i32, %arg2: i32) -> (i32, i32) {
    %c0_i32 = arith.constant 0 : i32
    %c0_i32_0 = arith.constant 0 : i32
    %c0_i32_1 = arith.constant 0 : i32
    return %c0_i32, %c0_i32_0 : i32, i32
  }
  func.func @transform_4(%arg0: i32, %arg1: i32, %arg2: i32) -> (i32, i32) {
    %c0_i32 = arith.constant 0 : i32
    %c0_i32_0 = arith.constant 0 : i32
    %c0_i32_1 = arith.constant 0 : i32
    return %c0_i32, %c0_i32_0 : i32, i32
  }
  func.func @transform_5(%arg0: i32, %arg1: i32, %arg2: i32) -> (i32, i32) {
    %c0_i32 = arith.constant 0 : i32
    %c0_i32_0 = arith.constant 0 : i32
    %c0_i32_1 = arith.constant 0 : i32
    return %c0_i32, %c0_i32_0 : i32, i32
  }
  func.func @transform_6(%arg0: i32, %arg1: i32, %arg2: i32) -> (i32, i32) {
    %c0_i32 = arith.constant 0 : i32
    %c0_i32_0 = arith.constant 0 : i32
    %c0_i32_1 = arith.constant 0 : i32
    return %c0_i32, %c0_i32_0 : i32, i32
  }
  func.func @transform_7(%arg0: i32, %arg1: i32, %arg2: i32) -> (i32, i32) {
    %c0_i32 = arith.constant 0 : i32
    %c0_i32_0 = arith.constant 0 : i32
    %c0_i32_1 = arith.constant 0 : i32
    return %c0_i32, %c0_i32_0 : i32, i32
  }
  func.func @transform_8(%arg0: i32, %arg1: i32, %arg2: i32) -> (i32, i32) {
    %c0_i32 = arith.constant 0 : i32
    %c0_i32_0 = arith.constant 0 : i32
    %c0_i32_1 = arith.constant 0 : i32
    return %c0_i32, %c0_i32_0 : i32, i32
  }
  func.func @transform_9(%arg0: i32, %arg1: i32, %arg2: i32) -> (i32, i32) {
    %c0_i32 = arith.constant 0 : i32
    %c0_i32_0 = arith.constant 0 : i32
    %c0_i32_1 = arith.constant 0 : i32
    return %c0_i32, %c0_i32_0 : i32, i32
  }
  func.func @transform_10(%arg0: i32, %arg1: i32, %arg2: i32) -> (i32, i32) {
    %c0_i32 = arith.constant 0 : i32
    %c0_i32_0 = arith.constant 0 : i32
    %c0_i32_1 = arith.constant 0 : i32
    return %c0_i32, %c0_i32_0 : i32, i32
  }
  func.func @transform_11(%arg0: i32, %arg1: i32, %arg2: i32) -> (i32, i32) {
    %c0_i32 = arith.constant 0 : i32
    %c0_i32_0 = arith.constant 0 : i32
    %c0_i32_1 = arith.constant 0 : i32
    return %c0_i32, %c0_i32_0 : i32, i32
  }
  func.func @transform_12(%arg0: i32, %arg1: i32, %arg2: i32) -> (i32, i32) {
    %c0_i32 = arith.constant 0 : i32
    %c0_i32_0 = arith.constant 0 : i32
    %c0_i32_1 = arith.constant 0 : i32
    return %c0_i32, %c0_i32_0 : i32, i32
  }
  func.func @transform_13(%arg0: i32, %arg1: i32, %arg2: i32) -> (i32, i32) {
    %c0_i32 = arith.constant 0 : i32
    %c0_i32_0 = arith.constant 0 : i32
    %c0_i32_1 = arith.constant 0 : i32
    return %c0_i32, %c0_i32_0 : i32, i32
  }
  func.func @transform_14(%arg0: i32, %arg1: i32, %arg2: i32) -> (i32, i32) {
    %c0_i32 = arith.constant 0 : i32
    %c0_i32_0 = arith.constant 0 : i32
    %c0_i32_1 = arith.constant 0 : i32
    return %c0_i32, %c0_i32_0 : i32, i32
  }
  func.func @transform_15(%arg0: i32, %arg1: i32, %arg2: i32) -> (i32, i32) {
    %c0_i32 = arith.constant 0 : i32
    %c0_i32_0 = arith.constant 0 : i32
    %c0_i32_1 = arith.constant 0 : i32
    return %c0_i32, %c0_i32_0 : i32, i32
  }
  func.func @transform_16(%arg0: i32, %arg1: i32, %arg2: i32) -> (i32, i32) {
    %c0_i32 = arith.constant 0 : i32
    %0 = arith.cmpi eq, %arg1, %c0_i32 : i32
    %c0_i32_0 = arith.constant 0 : i32
    %1 = arith.select %0, %c0_i32_0, %arg2 : i32
    %c0_i32_1 = arith.constant 0 : i32
    %c0_i32_2 = arith.constant 0 : i32
    return %c0_i32_1, %1 : i32, i32
  }
  func.func @transform_17(%arg0: i32, %arg1: i32, %arg2: i32) -> (i32, i32) {
    %c0_i32 = arith.constant 0 : i32
    %0 = arith.cmpi eq, %arg1, %c0_i32 : i32
    %c0_i32_0 = arith.constant 0 : i32
    %1 = arith.select %0, %c0_i32_0, %arg2 : i32
    %c0_i32_1 = arith.constant 0 : i32
    %c0_i32_2 = arith.constant 0 : i32
    return %c0_i32_1, %1 : i32, i32
  }
  func.func @transform_18(%arg0: i32, %arg1: i32, %arg2: i32) -> (i32, i32) {
    %c0_i32 = arith.constant 0 : i32
    %c0_i32_0 = arith.constant 0 : i32
    return %arg0, %c0_i32 : i32, i32
  }
  func.func @transform_19(%arg0: i32, %arg1: i32, %arg2: i32) -> (i32, i32) {
    %c2_i32 = arith.constant 2 : i32
    %0 = arith.cmpi eq, %arg1, %c2_i32 : i32
    %c0_i32 = arith.constant 0 : i32
    %1 = arith.select %0, %arg2, %c0_i32 : i32
    %c0_i32_0 = arith.constant 0 : i32
    return %arg0, %1 : i32, i32
  }
}

</mosaic_0001>

<bundles_post_ra>
// kernel: _ntm_forward_impl.1
= control target key start
LH: loop header
LB: loop body
LE: loop exit
PB: predicated region body
PF: predicated region fallthrough
CT: control target
= control target key end

     0   :  { %s5059_s0 = inlined_call_operand.vmem [shape: bf16[16,1024], index: 0, kind: input, shape index: {}]   ;;  %s5060_s1 = inlined_call_operand.vmem [shape: f32[16,128], index: 1, kind: input, shape index: {}]   ;;  %s5061_s2 = inlined_call_operand.vmem [shape: bf16[1024,256], index: 2, kind: input, shape index: {}]   ;;  %s5062_s3 = inlined_call_operand.vmem [shape: f32[1,128], index: 3, kind: input, shape index: {}]   ;;  %s5063_s4 = inlined_call_operand.vmem [shape: bf16[128,128], index: 4, kind: input, shape index: {}]   ;;  %s5064_s5 = inlined_call_operand.vmem [shape: f32[1,128], index: 5, kind: input, shape index: {}]   ;;  %s5065_s6 = inlined_call_operand.vmem [shape: bf16[128,256], index: 6, kind: input, shape index: {}]   ;;  %s5066_s7 = inlined_call_operand.vmem [shape: f32[1,256], index: 7, kind: input, shape index: {}]   ;;  %s5067_s8 = inlined_call_operand.vmem [shape: bf16[128,128], index: 8, kind: input, shape index: {}]   ;;  %s5068_s9 = inlined_call_operand.vmem [shape: f32[1,128], index: 9, kind: input, shape index: {}]   ;;  %s5069_s10 = inlined_call_operand.vmem [shape: bf16[128,128], index: 10, kind: input, shape index: {}]   ;;  %s5070_s11 = inlined_call_operand.vmem [shape: f32[1,128], index: 11, kind: input, shape index: {}]   ;;  %s5071_s12 = inlined_call_operand.vmem [shape: bf16[128,128], index: 12, kind: input, shape index: {}]   ;;  %s5072_s13 = inlined_call_operand.vmem [shape: f32[1,128], index: 13, kind: input, shape index: {}]   ;;  %s5073_s14 = inlined_call_operand.vmem [shape: bf16[128,128], index: 14, kind: input, shape index: {}]   ;;  %s5074_s15 = inlined_call_operand.vmem [shape: f32[1,128], index: 15, kind: input, shape index: {}]   ;;  %s5075_s16 = inlined_call_operand.vmem [shape: bf16[128,1024], index: 16, kind: input, shape index: {}]   ;;  %s5076_s17 = inlined_call_operand.vmem [shape: f32[1,1024], index: 17, kind: input, shape index: {}]   ;;  %s5077_s18 = inlined_call_operand.vmem [shape: f32[16,640], index: 18, kind: output, shape index: {0}]   ;;  %s5078_s19 = inlined_call_operand.hbm [shape: f32[16,1024], index: 19, kind: output, shape index: {1}]  }
   0x1   :  { %5096 = sst [smem:[#allocation15_spill]] %s5059_s0 }
   0x2   :  { %5097 = sst [smem:[#allocation16_spill]] %s5060_s1 }
   0x3   :  { %5098 = sst [smem:[#allocation17_spill]] %s5061_s2 }
   0x4   :  { %5099 = sst [smem:[#allocation18_spill]] %s5062_s3 }
   0x5   :  { %5100 = sst [smem:[#allocation19_spill]] %s5063_s4 }
   0x6   :  { %5101 = sst [smem:[#allocation20_spill]] %s5064_s5 }
   0x7   :  { %5102 = sst [smem:[#allocation21_spill]] %s5065_s6 }
   0x8   :  { %5103 = sst [smem:[#allocation22_spill]] %s5066_s7 }
   0x9   :  { %5104 = sst [smem:[#allocation23_spill]] %s5067_s8 }
   0xa   :  { %5105 = sst [smem:[#allocation24_spill]] %s5068_s9 }
   0xb   :  { %5106 = sst [smem:[#allocation25_spill]] %s5069_s10 }
   0xc   :  { %5107 = sst [smem:[#allocation26_spill]] %s5070_s11 }
   0xd   :  { %5108 = sst [smem:[#allocation27_spill]] %s5071_s12 }
   0xe   :  { %5109 = sst [smem:[#allocation28_spill]] %s5072_s13 }
   0xf   :  { %5110 = sst [smem:[#allocation29_spill]] %s5073_s14 }
  0x10   :  { %5111 = sst [smem:[#allocation30_spill]] %s5074_s15 }
  0x11   :  { %5112 = sst [smem:[#allocation31_spill]] %s5075_s16 }
  0x12   :  { %5113 = sst [smem:[#allocation32_spill]] %s5077_s18 }
  0x13   :  { %5114 = sst [smem:[#allocation33_spill]] %s5078_s19 }
  0x14   :  { %25 = vsyncpa [#allocation9], 0 }
  0x15   :  { %27 = vsyncpa [#allocation9 + $0x1], 0  ;;  %s4288_s0 = smov 0   ;;  %s4290_s30 = smov 0  }
  0x16   :  { %s4292_s20 = smov 0   ;;  %s4294_s21 = smov 0  }
  0x17   :  { %s4296_s1 = smov 0   ;;  %s4298_s22 = smov 0  }
  0x18   :  { %s4300_s2 = smov 0   ;;  %s4302_s23 = smov 0  }
  0x19   :  { %s4304_s24 = smov 0   ;;  %s4306_s25 = smov 0  }
  0x1a   :  { %s4308_s3 = smov 0   ;;  %s4310_s26 = smov 0  }
  0x1b LB: > { %5115 = sst [smem:[#allocation11_spill]] %s4166_s25  ;;  %s45_s29 = sadd.s32 1, %s4166_s25  ;;  %s4174_s26 = sphi %s4310_s26, %s33_s26   ;;  %s4170_s3 = sphi %s4308_s3, %s5150_s3   ;;  %s4166_s25 = sphi %s4306_s25, %s5149_s25   ;;  %s4162_s24 = sphi %s4304_s24, %s5148_s24   ;;  %s4158_s23 = sphi %s4302_s23, %s5147_s23   ;;  %s4154_s2 = sphi %s4300_s2, %s5157_s2   ;;  %s4150_s22 = sphi %s4298_s22, %s5156_s22   ;;  %s4146_s1 = sphi %s4296_s1, %s5155_s1   ;;  %s4142_s21 = sphi %s4294_s21, %s5154_s21   ;;  %s4138_s20 = sphi %s4292_s20, %s5153_s20   ;;  %s4134_s30 = sphi %s4290_s30, %s5152_s30   ;;  %s4130_s0 = sphi %s4288_s0, %s5151_s0  }
  0x1c   : > { %5116 = sst [smem:[#allocation12_spill]] %s4170_s3  ;;  %s48_s19 = sadd.s32 1, %s4170_s3 }
  0x1d   : > { %p46_p0 = scmp.ge.s32.totalorder %s45_s29, 2  ;;  %p56_p1 = scmp.eq.s32.totalorder %s4170_s3, 0 }
  0x1e   : > { %s65_s15 = sadd.s32 1, %s4154_s2  ;;  %p72_p2 = scmp.ne.s32.totalorder %s4154_s2, %s4150_s22 }
  0x1f   : > { %s5159_s29 = smov (%p46_p0, %s45_s29), 0  ;;  %s5161_s19 = smov (!%p46_p0, %s48_s19), %s4170_s3 }
  0x20   : > { %5117 = sst [smem:[#allocation13_spill]] %s5159_s29  ;;  %p50_p3 = scmp.ge.s32.totalorder %s5161_s19, 3 }
  0x21   : > { %s4360_s13 = scalar_select %p56_p1, %s4166_s25, 1 }
  0x22   : > { %p73_p4 = scmp.eq.s32.totalorder %s4174_s26, 0  ;;  %s5163_s19 = smov (%p50_p3, %s5161_s19), 0 }
  0x23   : > { %s4364_s28 = scalar_select %p56_p1, 0, %s4166_s25 }
  0x24   : > { %5118 = sst [smem:[#allocation14_spill]] %s5163_s19  ;;  %p4368_p5 = por %p73_p4, %p72_p2 }
  0x25   : > { %s424_s11 = sadd.s32 1, %s4146_s1  ;;  %p58_p6 = scmp.eq.s32.totalorder %s5163_s19, 0 }
  0x26   : > { %p431_p7 = scmp.ne.s32.totalorder %s4146_s1, %s4142_s21  ;;  %p503_p8 = scmp.eq.s32.totalorder %s4170_s3, 2 }
  0x27   : > { %p505_p9 = scmp.eq.s32.totalorder %s5163_s19, 2  ;;  %s512_s7 = sadd.s32 1, %s4138_s20 }
  0x28   : > { %s59_s14 = scalar_select %p58_p6, %s5159_s29, 1 }
  0x29   : > { %s420_s9 = scalar_select %p58_p6, 0, %s5159_s29 }
  0x2a   : > { %s61_s12 = ssub.s32 %s4360_s13, %s59_s14  ;;  %p4381_p10 = por %p431_p7, %p73_p4 }
  0x2b   : > { %p63_p11 = scmp.eq.s32.totalorder %s61_s12, 0  ;;  %s421_s18 = ssub.s32 %s4364_s28, %s420_s9 }
  0x2c   : > { %p422_p12 = scmp.eq.s32.totalorder %s421_s18, 0  ;;  %p522_p13 = scmp.ne.s32.totalorder %s4138_s20, %s4134_s30 }
  0x2d   : > { %s4388_s5 = scalar_select %p63_p11, %s4154_s2, %s65_s15  }
  0x2e   : > { %s4391_s8 = scalar_select %p422_p12, %s4146_s1, %s424_s11  }
  0x2f   : > { %s504_s19 = scalar_select %p503_p8, %s4166_s25, 0 }
  0x30   : > { %s506_s3 = scalar_select %p505_p9, %s5159_s29, 0 }
  0x31   : > { %s5121_s6 = sadd.s32 4294967295, %s4174_s26   ;;  %p528_p1 = scmp.ne.s32.totalorder %s4134_s30, %s4130_s0 }
  0x32   : > { %p523_p0 = scmp.eq.s32.totalorder %s5121_s6, 5  ;;  %s508_s14 = ssub.s32 %s504_s19, %s506_s3 }
  0x33   : > { %p510_p2 = scmp.eq.s32.totalorder %s508_s14, 0  ;;  %s5123_s12 = sadd.s32 4294967294, %s4174_s26  }
  0x34   : > { %p4401_p3 = por %p523_p0, %p522_p13  ;;  %p529_p4 = scmp.eq.s32.totalorder %s5123_s12, 5 }
  0x35   : > { %s4408_s9 = scalar_select %p510_p2, %s4138_s20, %s512_s7  }
  0x36   : > { %p4410_p6 = por %p529_p4, %p528_p1  ;;  %p3222_p7 = scmp.ge.s32.totalorder %s4174_s26, 6 }
  0x38   : > { %593 = sbr.rel (%p3222_p7) target bundleno = 101 (0x65), region = 72 }
  0x3f   : > { %596 = sbr.rel (!%p4368_p5) target bundleno = 75 (0x4b), region = 76  ;;  %s598_s6 = sand.u32 (%p4368_p5), 1, %s4154_s2  }
  0x40   : > { %s3447_s11 = sshll.u32 (%p4368_p5), %s4360_s13, 4  ;;  %s3223_s18 = sshll.u32 (%p4368_p5), %s598_s6, 5 }
  0x41   : > { %s5125_s14 = sld [smem:[#allocation15_spill]] (%p4368_p5)  ;;  %s600_s12 = scalar_lea.vmem (%p4368_p5), [#allocation6], %s3223_s18 }
  0x47   : > { %s608_s7 = scalar_lea.vmem %s5125_s14, %s3447_s11 }
  0x48   : > { %v621_v0 = vld [vmem:[%s608_s7] sm:$0xff]  ;;  %v623_v1 = vld [vmem:[%s608_s7 + $0x8] sm:$0xff] }
  0x49   : > { %v625_v2 = vld [vmem:[%s608_s7 + $0x20] sm:$0xff]  ;;  %622 = vst [vmem:[%s600_s12] sm:$0xff] %v621_v0  ;;  %624 = vst [vmem:[%s600_s12 + $0x8] sm:$0xff] %v623_v1  ;;  %v627_v3 = vld [vmem:[%s608_s7 + $0x28] sm:$0xff] }
  0x4a   : > { %626 = vst [vmem:[%s600_s12 + $0x10] sm:$0xff] %v625_v2  ;;  %628 = vst [vmem:[%s600_s12 + $0x18] sm:$0xff] %v627_v3 }
  0x4b PF: > { %648 = sbr.rel (!%p4381_p10) target bundleno = 101 (0x65), region = 103  ;;  %s650_s13 = sand.u32 (%p4381_p10), 1, %s4146_s1  }
  0x4c   : > { %s3448_s27 = sshll.u32 (%p4381_p10), %s4364_s28, 4  ;;  %s3226_s6 = sshll.u32 (%p4381_p10), %s650_s13, 8 }
  0x4d   : > { %s5126_s16 = sld [smem:[#allocation31_spill]] (%p4381_p10)  ;;  %s4434_s10 = scalar_lea.vmem (%p4381_p10), [#allocation7], %s3226_s6 }
  0x53   : > { %s4429_s3 = scalar_lea.vmem %s5126_s16, %s3448_s27 }
  0x54   : > { %v670_v4 = vld [vmem:[%s4429_s3] sm:$0xff]  ;;  %v672_v5 = vld [vmem:[%s4429_s3 + $0x8] sm:$0xff] }
  0x55   : > { %v674_v6 = vld [vmem:[%s4429_s3 + $0x20] sm:$0xff]  ;;  %671 = vst [vmem:[%s4434_s10] sm:$0xff] %v670_v4  ;;  %673 = vst [vmem:[%s4434_s10 + $0x8] sm:$0xff] %v672_v5  ;;  %v676_v7 = vld [vmem:[%s4429_s3 + $0x28] sm:$0xff] }
  0x56   : > { %675 = vst [vmem:[%s4434_s10 + $0x10] sm:$0xff] %v674_v6  ;;  %v678_v8 = vld [vmem:[%s4429_s3 + $0x40] sm:$0xff]  ;;  %v680_v9 = vld [vmem:[%s4429_s3 + $0x48] sm:$0xff]  ;;  %677 = vst [vmem:[%s4434_s10 + $0x18] sm:$0xff] %v676_v7 }
  0x57   : > { %679 = vst [vmem:[%s4434_s10 + $0x20] sm:$0xff] %v678_v8  ;;  %681 = vst [vmem:[%s4434_s10 + $0x28] sm:$0xff] %v680_v9  ;;  %v682_v10 = vld [vmem:[%s4429_s3 + $0x60] sm:$0xff]  ;;  %v684_v11 = vld [vmem:[%s4429_s3 + $0x68] sm:$0xff] }
  0x58   : > { %v686_v12 = vld [vmem:[%s4429_s3 + $0x80] sm:$0xff]  ;;  %683 = vst [vmem:[%s4434_s10 + $0x30] sm:$0xff] %v682_v10  ;;  %685 = vst [vmem:[%s4434_s10 + $0x38] sm:$0xff] %v684_v11  ;;  %v688_v13 = vld [vmem:[%s4429_s3 + $0x88] sm:$0xff] }
  0x59   : > { %687 = vst [vmem:[%s4434_s10 + $0x40] sm:$0xff] %v686_v12  ;;  %v690_v14 = vld [vmem:[%s4429_s3 + $0xa0] sm:$0xff]  ;;  %v692_v15 = vld [vmem:[%s4429_s3 + $0xa8] sm:$0xff]  ;;  %689 = vst [vmem:[%s4434_s10 + $0x48] sm:$0xff] %v688_v13 }
  0x5a   : > { %691 = vst [vmem:[%s4434_s10 + $0x50] sm:$0xff] %v690_v14  ;;  %693 = vst [vmem:[%s4434_s10 + $0x58] sm:$0xff] %v692_v15  ;;  %v694_v16 = vld [vmem:[%s4429_s3 + $0xc0] sm:$0xff]  ;;  %v696_v17 = vld [vmem:[%s4429_s3 + $0xc8] sm:$0xff] }
  0x5b   : > { %v698_v18 = vld [vmem:[%s4429_s3 + $0xe0] sm:$0xff]  ;;  %695 = vst [vmem:[%s4434_s10 + $0x60] sm:$0xff] %v694_v16  ;;  %697 = vst [vmem:[%s4434_s10 + $0x68] sm:$0xff] %v696_v17  ;;  %v700_v19 = vld [vmem:[%s4429_s3 + $0xe8] sm:$0xff] }
  0x5c   : > { %699 = vst [vmem:[%s4434_s10 + $0x70] sm:$0xff] %v698_v18  ;;  %v702_v20 = vld [vmem:[%s4429_s3 + $0x100] sm:$0xff]  ;;  %v704_v21 = vld [vmem:[%s4429_s3 + $0x108] sm:$0xff]  ;;  %701 = vst [vmem:[%s4434_s10 + $0x78] sm:$0xff] %v700_v19 }
  0x5d   : > { %703 = vst [vmem:[%s4434_s10 + $0x80] sm:$0xff] %v702_v20  ;;  %705 = vst [vmem:[%s4434_s10 + $0x88] sm:$0xff] %v704_v21  ;;  %v706_v22 = vld [vmem:[%s4429_s3 + $0x120] sm:$0xff]  ;;  %v708_v23 = vld [vmem:[%s4429_s3 + $0x128] sm:$0xff] }
  0x5e   : > { %v710_v24 = vld [vmem:[%s4429_s3 + $0x140] sm:$0xff]  ;;  %707 = vst [vmem:[%s4434_s10 + $0x90] sm:$0xff] %v706_v22  ;;  %709 = vst [vmem:[%s4434_s10 + $0x98] sm:$0xff] %v708_v23  ;;  %v712_v25 = vld [vmem:[%s4429_s3 + $0x148] sm:$0xff] }
  0x5f   : > { %711 = vst [vmem:[%s4434_s10 + $0xa0] sm:$0xff] %v710_v24  ;;  %v714_v26 = vld [vmem:[%s4429_s3 + $0x160] sm:$0xff]  ;;  %v716_v27 = vld [vmem:[%s4429_s3 + $0x168] sm:$0xff]  ;;  %713 = vst [vmem:[%s4434_s10 + $0xa8] sm:$0xff] %v712_v25 }
  0x60   : > { %715 = vst [vmem:[%s4434_s10 + $0xb0] sm:$0xff] %v714_v26  ;;  %717 = vst [vmem:[%s4434_s10 + $0xb8] sm:$0xff] %v716_v27  ;;  %v718_v28 = vld [vmem:[%s4429_s3 + $0x180] sm:$0xff]  ;;  %v720_v29 = vld [vmem:[%s4429_s3 + $0x188] sm:$0xff] }
  0x61   : > { %v722_v30 = vld [vmem:[%s4429_s3 + $0x1a0] sm:$0xff]  ;;  %719 = vst [vmem:[%s4434_s10 + $0xc0] sm:$0xff] %v718_v28  ;;  %721 = vst [vmem:[%s4434_s10 + $0xc8] sm:$0xff] %v720_v29  ;;  %v724_v31 = vld [vmem:[%s4429_s3 + $0x1a8] sm:$0xff] }
  0x62   : > { %723 = vst [vmem:[%s4434_s10 + $0xd0] sm:$0xff] %v722_v30  ;;  %v726_v32 = vld [vmem:[%s4429_s3 + $0x1c0] sm:$0xff]  ;;  %v728_v33 = vld [vmem:[%s4429_s3 + $0x1c8] sm:$0xff]  ;;  %725 = vst [vmem:[%s4434_s10 + $0xd8] sm:$0xff] %v724_v31 }
  0x63   : > { %727 = vst [vmem:[%s4434_s10 + $0xe0] sm:$0xff] %v726_v32  ;;  %729 = vst [vmem:[%s4434_s10 + $0xe8] sm:$0xff] %v728_v33  ;;  %v730_v34 = vld [vmem:[%s4429_s3 + $0x1e0] sm:$0xff]  ;;  %v732_v35 = vld [vmem:[%s4429_s3 + $0x1e8] sm:$0xff] }
  0x64   : > { %731 = vst [vmem:[%s4434_s10 + $0xf0] sm:$0xff] %v730_v34  ;;  %733 = vst [vmem:[%s4434_s10 + $0xf8] sm:$0xff] %v732_v35 }
  0x65 PF: > { %p3229_p5 = scmp.ge.s32.totalorder %s4174_s26, 1  ;;  %p750_p8 = scmp.lt.s32.totalorder %s4174_s26, 7 }
  0x67   : > { %p751_p9 = pnand %p3229_p5, %p750_p8 }
  0x68   : > { %s757_s28 = sand.u32 (!%p751_p9), 1, %s4150_s22   ;;  %s764_s18 = sand.u32 (!%p751_p9), 1, %s4142_s21  }
  0x69   : > { %754 = sbr.rel (%p751_p9) target bundleno = 2846 (0xb1e), region = 130  ;;  %s3230_s14 = sshll.u32 (!%p751_p9), %s757_s28, 5 }
  0x6a   : > { %s3231_s7 = sshll.u32 (!%p751_p9), %s764_s18, 8  ;;  %s5091_s12 = sand.u32 (!%p751_p9), 1, %s4134_s30  }
  0x6b   : > { %p858_p10 = scmp.eq.s32.totalorder (!%p751_p9), %s4162_s24, 0  ;;  %s3232_s13 = sshll.u32 (!%p751_p9), %s5091_s12, 6 }
  0x6c   : > { %s5127_s29 = sld [smem:[#allocation17_spill]] (!%p751_p9)  ;;  %s4517_s12 = scalar_lea.vmem (!%p751_p9), [#allocation6], %s3230_s14 }
  0x6d   : > { %s4519_s25 = scalar_lea.vmem (!%p751_p9), [#allocation7], %s3231_s7  ;;  %p3237_p13 = scmp.ne.s32.totalorder (!%p751_p9), %s4162_s24, 0 }
  0x70   : > { %s859_s27 = scalar_select %p858_p10, %s4158_s23, 1 }
  0x71   : > { %s873_s6 = scalar_select %p858_p10, 0, %s4158_s23 }
  0x72   : > { %s3233_s19 = sshll.u32 %s859_s27, 6  ;;  %s4521_s27 = scalar_lea.vmem [#allocation8], %s3232_s13 }
  0x73   : > { %p861_p11 = scmp.lt.s32.totalorder %s3233_s19, 127  ;;  %s3236_s11 = sshll.u32 %s873_s6, 2 }
  0x74   : > { %p875_p12 = scmp.lt.s32.totalorder %s3236_s11, 7  ;;  %896 = sbr.rel (%p3237_p13) target bundleno = 1807 (0x70f), region = 142 }
  0x75   : > { %s5165_s19 = smov (!%p861_p11, %s3233_s19), 127  ;;  %p3238_p0 = scmp.ne.s32.totalorder (!%p3237_p13), %s4158_s23, 0 }
  0x76   : > { %s5167_s11 = smov (!%p875_p12, %s3236_s11), 7  ;;  %s3449_s3 = sshll.u32 %s5165_s19, 3 }
  0x77   : > { %s4510_s22 = scalar_lea.vmem %s5127_s29, %s3449_s3  ;;  %s4515_s18 = scalar_lea.vmem %s5076_s17, %s5167_s11 }
  0x7b   : > { %900 = sbr.rel (%p3238_p0) target bundleno = 130 (0x82), region = 146  ;;  %v4176_v36 = vmov (!%p3238_p0), 0.0  }
  0x7c   : > { %901 = vst [vmem:[#allocation2] sm:$0xff] (!%p3238_p0), %v4176_v36  ;;  %902 = vst [vmem:[#allocation2 + $0x8] sm:$0xff] (!%p3238_p0), %v4176_v36 }
  0x7d   : > { %903 = vst [vmem:[#allocation2 + $0x10] sm:$0xff] (!%p3238_p0), %v4176_v36  ;;  %904 = vst [vmem:[#allocation2 + $0x18] sm:$0xff] (!%p3238_p0), %v4176_v36 }
  0x82 PF: > { %v3714_v37 = vld [vmem:[%s4510_s22 + $0x4] ss:$8 sps:$4 sm:$0xff]   ;;  %v3718_v39 = vld [vmem:[%s4510_s22] ss:$8 sps:$4 sm:$0xff]   ;;  %v3720_v41 = vld [vmem:[%s4510_s22 + $0x14] ss:$8 sps:$4 sm:$0xff]  }
  0x83   : > { %v3716_v38 = vld [vmem:[%s4510_s22 + $0x104] ss:$8 sps:$4 sm:$0xff]   ;;  %1317 = vmatprep.subr.bf16.mxu1 %v3714_v37  ;;  %v3719_v40 = vld [vmem:[%s4510_s22 + $0x100] ss:$8 sps:$4 sm:$0xff]   ;;  %v3722_v42 = vld [vmem:[%s4510_s22 + $0x114] ss:$8 sps:$4 sm:$0xff]  }
  0x84   : > { %1360 = vmatprep.subr.bf16.mxu0 %v3716_v38  ;;  %1318 = vmatpush1.bf16.msra.mxu1 %v3718_v39  ;;  %v3724_v43 = vld [vmem:[%s4510_s22 + $0x10] ss:$8 sps:$4 sm:$0xff]   ;;  %v3726_v45 = vld [vmem:[%s4510_s22 + $0x24] ss:$8 sps:$4 sm:$0xff]   ;;  %v3730_v47 = vld [vmem:[%s4510_s22 + $0x20] ss:$8 sps:$4 sm:$0xff]  }
  0x85   : > { %1361 = vmatpush1.bf16.msra.mxu0 %v3719_v40  ;;  %1319 = vmatprep.subr.bf16.mxu1 %v3720_v41  ;;  %v3725_v44 = vld [vmem:[%s4510_s22 + $0x110] ss:$8 sps:$4 sm:$0xff]   ;;  %v3728_v46 = vld [vmem:[%s4510_s22 + $0x124] ss:$8 sps:$4 sm:$0xff]   ;;  %v3731_v48 = vld [vmem:[%s4510_s22 + $0x120] ss:$8 sps:$4 sm:$0xff]  }
  0x86   : > { %1362 = vmatprep.subr.bf16.mxu0 %v3722_v42  ;;  %v3732_v49 = vld [vmem:[%s4510_s22 + $0x34] ss:$8 sps:$4 sm:$0xff]   ;;  %v3736_v51 = vld [vmem:[%s4510_s22 + $0x30] ss:$8 sps:$4 sm:$0xff]   ;;  %v3738_v53 = vld [vmem:[%s4510_s22 + $0x44] ss:$8 sps:$4 sm:$0xff]  }
  0x87   : > { %v3734_v50 = vld [vmem:[%s4510_s22 + $0x134] ss:$8 sps:$4 sm:$0xff]   ;;  %v3737_v52 = vld [vmem:[%s4510_s22 + $0x130] ss:$8 sps:$4 sm:$0xff]   ;;  %v3740_v54 = vld [vmem:[%s4510_s22 + $0x144] ss:$8 sps:$4 sm:$0xff]  }
  0x88   : > { %1320 = vmatpush1.bf16.msra.mxu1 %v3724_v43  ;;  %v3742_v55 = vld [vmem:[%s4510_s22 + $0x40] ss:$8 sps:$4 sm:$0xff]   ;;  %v3744_v57 = vld [vmem:[%s4510_s22 + $0x54] ss:$8 sps:$4 sm:$0xff]   ;;  %v3748_v59 = vld [vmem:[%s4510_s22 + $0x50] ss:$8 sps:$4 sm:$0xff]  }
  0x89   : > { %1363 = vmatpush1.bf16.msra.mxu0 %v3725_v44  ;;  %1321 = vmatprep.subr.bf16.mxu1 %v3726_v45  ;;  %v3743_v56 = vld [vmem:[%s4510_s22 + $0x140] ss:$8 sps:$4 sm:$0xff]   ;;  %v3746_v58 = vld [vmem:[%s4510_s22 + $0x154] ss:$8 sps:$4 sm:$0xff]   ;;  %v3749_v60 = vld [vmem:[%s4510_s22 + $0x150] ss:$8 sps:$4 sm:$0xff]  }
  0x8a   : > { %1364 = vmatprep.subr.bf16.mxu0 %v3728_v46  ;;  %v3750_v61 = vld [vmem:[%s4510_s22 + $0x64] ss:$8 sps:$4 sm:$0xff]   ;;  %v3754_v63 = vld [vmem:[%s4510_s22 + $0x60] ss:$8 sps:$4 sm:$0xff]   ;;  %v3756_v1 = vld [vmem:[%s4510_s22 + $0x74] ss:$8 sps:$4 sm:$0xff]  }
  0x8b   : > { %v3752_v62 = vld [vmem:[%s4510_s22 + $0x164] ss:$8 sps:$4 sm:$0xff]   ;;  %v3755_v0 = vld [vmem:[%s4510_s22 + $0x160] ss:$8 sps:$4 sm:$0xff]   ;;  %v3758_v2 = vld [vmem:[%s4510_s22 + $0x174] ss:$8 sps:$4 sm:$0xff]  }
  0x8c   : > { %1322 = vmatpush1.bf16.msra.mxu1 %v3730_v47  ;;  %v3760_v3 = vld [vmem:[%s4510_s22 + $0x70] ss:$8 sps:$4 sm:$0xff]   ;;  %v3762_v5 = vld [vmem:[%s4510_s22 + $0x84] ss:$8 sps:$4 sm:$0xff]   ;;  %v3766_v7 = vld [vmem:[%s4510_s22 + $0x80] ss:$8 sps:$4 sm:$0xff]  }
  0x8d   : > { %1365 = vmatpush1.bf16.msra.mxu0 %v3731_v48  ;;  %1323 = vmatprep.subr.bf16.mxu1 %v3732_v49  ;;  %v3761_v4 = vld [vmem:[%s4510_s22 + $0x170] ss:$8 sps:$4 sm:$0xff]   ;;  %v3764_v6 = vld [vmem:[%s4510_s22 + $0x184] ss:$8 sps:$4 sm:$0xff]   ;;  %v3767_v8 = vld [vmem:[%s4510_s22 + $0x180] ss:$8 sps:$4 sm:$0xff]  }
  0x8e   : > { %1366 = vmatprep.subr.bf16.mxu0 %v3734_v50  ;;  %v3768_v9 = vld [vmem:[%s4510_s22 + $0x94] ss:$8 sps:$4 sm:$0xff]   ;;  %v3772_v11 = vld [vmem:[%s4510_s22 + $0x90] ss:$8 sps:$4 sm:$0xff]   ;;  %v3774_v13 = vld [vmem:[%s4510_s22 + $0xa4] ss:$8 sps:$4 sm:$0xff]  }
  0x8f   : > { %v3770_v10 = vld [vmem:[%s4510_s22 + $0x194] ss:$8 sps:$4 sm:$0xff]   ;;  %v3773_v12 = vld [vmem:[%s4510_s22 + $0x190] ss:$8 sps:$4 sm:$0xff]   ;;  %v3776_v14 = vld [vmem:[%s4510_s22 + $0x1a4] ss:$8 sps:$4 sm:$0xff]  }
  0x90   : > { %1324 = vmatpush1.bf16.msra.mxu1 %v3736_v51  ;;  %v3778_v15 = vld [vmem:[%s4510_s22 + $0xa0] ss:$8 sps:$4 sm:$0xff]   ;;  %v3780_v17 = vld [vmem:[%s4510_s22 + $0xb4] ss:$8 sps:$4 sm:$0xff]   ;;  %v3784_v19 = vld [vmem:[%s4510_s22 + $0xb0] ss:$8 sps:$4 sm:$0xff]  }
  0x91   : > { %1367 = vmatpush1.bf16.msra.mxu0 %v3737_v52  ;;  %1325 = vmatprep.subr.bf16.mxu1 %v3738_v53  ;;  %v3779_v16 = vld [vmem:[%s4510_s22 + $0x1a0] ss:$8 sps:$4 sm:$0xff]   ;;  %v3782_v18 = vld [vmem:[%s4510_s22 + $0x1b4] ss:$8 sps:$4 sm:$0xff]   ;;  %v3785_v21 = vld [vmem:[%s4510_s22 + $0x1b0] ss:$8 sps:$4 sm:$0xff]  }
  0x92   : > { %1368 = vmatprep.subr.bf16.mxu0 %v3740_v54  ;;  %v3812_v20 = vld [vmem:[%s4517_s12 + $0x4] ss:$16 sps:$4 sm:$0xff]   ;;  %v3815_v24 = vld [vmem:[%s4517_s12 + $0xc] ss:$16 sps:$4 sm:$0xff]   ;;  %v3790_v25 = vld [vmem:[%s4510_s22 + $0xc0] ss:$8 sps:$4 sm:$0xff]  }
  0x93   : > { %v3786_v22 = vld [vmem:[%s4510_s22 + $0xc4] ss:$8 sps:$4 sm:$0xff]   ;;  %1349 = vmatprep.mubr.bf16.mxu1 %v3812_v20  ;;  %1392 = vmatprep.mubr.bf16.mxu0 %v3815_v24  ;;  %v3791_v26 = vld [vmem:[%s4510_s22 + $0x1c0] ss:$8 sps:$4 sm:$0xff]   ;;  %v3792_v27 = vld [vmem:[%s4510_s22 + $0xd4] ss:$8 sps:$4 sm:$0xff]  }
  0x94   : > { %1326 = vmatpush1.bf16.msra.mxu1 %v3742_v55  ;;  %v3788_v23 = vld [vmem:[%s4510_s22 + $0x1c4] ss:$8 sps:$4 sm:$0xff]   ;;  %v3794_v28 = vld [vmem:[%s4510_s22 + $0x1d4] ss:$8 sps:$4 sm:$0xff]   ;;  %v3796_v29 = vld [vmem:[%s4510_s22 + $0xd0] ss:$8 sps:$4 sm:$0xff]  }
  0x95   : > { %1369 = vmatpush1.bf16.msra.mxu0 %v3743_v56  ;;  %1327 = vmatprep.subr.bf16.mxu1 %v3744_v57  ;;  %v3797_v30 = vld [vmem:[%s4510_s22 + $0x1d0] ss:$8 sps:$4 sm:$0xff]   ;;  %v3798_v31 = vld [vmem:[%s4510_s22 + $0xe4] ss:$8 sps:$4 sm:$0xff]   ;;  %v3802_v33 = vld [vmem:[%s4510_s22 + $0xe0] ss:$8 sps:$4 sm:$0xff]  }
  0x96   : > { %1370 = vmatprep.subr.bf16.mxu0 %v3746_v58  ;;  %v3800_v32 = vld [vmem:[%s4510_s22 + $0x1e4] ss:$8 sps:$4 sm:$0xff]   ;;  %v3803_v34 = vld [vmem:[%s4510_s22 + $0x1e0] ss:$8 sps:$4 sm:$0xff]   ;;  %v3804_v35 = vld [vmem:[%s4510_s22 + $0xf4] ss:$8 sps:$4 sm:$0xff]  }
  0x97   : > { %v3806_v36 = vld [vmem:[%s4510_s22 + $0x1f4] ss:$8 sps:$4 sm:$0xff]   ;;  %v3808_v37 = vld [vmem:[%s4510_s22 + $0xf0] ss:$8 sps:$4 sm:$0xff]   ;;  %v905_v42 = vld [vmem:[#allocation2] sm:$0xff]  ;;  %p3307_p1 = scmp.ne.s32.totalorder %s4158_s23, 1 }
  0x98   : > { %1328 = vmatpush1.bf16.msra.mxu1 %v3748_v59  ;;  %v3809_v38 = vld [vmem:[%s4510_s22 + $0x1f0] ss:$8 sps:$4 sm:$0xff]   ;;  %v906_v46 = vld [vmem:[#allocation2 + $0x8] sm:$0xff]  ;;  %s5128_s14 = sld [smem:[#allocation19_spill]] (!%p3307_p1)  ;;  %vm4178_vm0 = vmmov (!%p3307_p1), 0   ;;  %s5129_s22 = sld [smem:[#allocation21_spill]] (!%p3307_p1) }
  0x99   : > { %1371 = vmatpush1.bf16.msra.mxu0 %v3749_v60  ;;  %1329 = vmatprep.subr.bf16.mxu1 %v3750_v61  ;;  %v3810_v39 = vld [vmem:[%s4517_s12] ss:$16 sps:$4 sm:$0xff]   ;;  %v3813_v40 = vld [vmem:[%s4517_s12 + $0x8] ss:$16 sps:$4 sm:$0xff]   ;;  %s5131_s12 = sld [smem:[#allocation18_spill]] (!%p3307_p1)  ;;  %s5132_s19 = sld [smem:[#allocation23_spill]] (!%p3307_p1) }
  0x9a   : > { %1372 = vmatprep.subr.bf16.mxu0 %v3752_v62  ;;  %v907_v50 = vld [vmem:[#allocation2 + $0x10] sm:$0xff]  ;;  %v908_v55 = vld [vmem:[#allocation2 + $0x18] sm:$0xff]  ;;  %v4177_v62 = vmov (!%p3307_p1), 0.0   ;;  %s5133_s10 = sld [smem:[#allocation20_spill]] (!%p3307_p1)  ;;  %s5135_s11 = sld [smem:[#allocation32_spill]] (!%p3307_p1) }
  0x9b   : > { %s5136_s13 = sld [smem:[#allocation16_spill]] (!%p3307_p1)  ;;  %s5138_s6 = sld [smem:[#allocation27_spill]] (!%p3307_p1) }
  0x9c   : > { %1330 = vmatpush1.bf16.msra.mxu1 %v3754_v63  ;;  %s5139_s3 = sld [smem:[#allocation24_spill]] (!%p3307_p1)  ;;  %s5141_s7 = sld [smem:[#allocation26_spill]] (!%p3307_p1) }
  0x9d   : > { %1373 = vmatpush1.bf16.msra.mxu0 %v3755_v0  ;;  %1331 = vmatprep.subr.bf16.mxu1 %v3756_v1  ;;  %s5143_s21 = sld [smem:[#allocation30_spill]] (!%p3307_p1) }
  0x9e   : > { %1374 = vmatprep.subr.bf16.mxu0 %v3758_v2  ;;  %v3816_v61 = vld [vmem:[%s5128_s14] sm:$0xff] (!%p3307_p1)   ;;  %v3817_v63 = vld [vmem:[%s5128_s14 + $0x8] sm:$0xff] (!%p3307_p1)   ;;  %v3818_v0 = vld [vmem:[%s5128_s14 + $0x10] sm:$0xff] (!%p3307_p1)   ;;  %s5130_s28 = smov (!%p3307_p1), %s5129_s22 }
  0x9f   : > { %v3819_v1 = vld [vmem:[%s5128_s14 + $0x18] sm:$0xff] (!%p3307_p1)   ;;  %v3822_v20 = vld [vmem:[%s5128_s14 + $0x30] sm:$0xff] (!%p3307_p1)  }
  0xa0   : > { %1332 = vmatpush1.bf16.msra.mxu1 %v3760_v3  ;;  %v3824_v3 = vld [vmem:[%s5129_s22 + $0x4] ss:$8 sps:$4 sm:$0xff] (!%p3307_p1)  }
  0xa1   : > { %1375 = vmatpush1.bf16.msra.mxu0 %v3761_v4  ;;  %1333 = vmatprep.subr.bf16.mxu1 %v3762_v5  ;;  %v3826_v4 = vld [vmem:[%s5130_s28] ss:$8 sps:$4 sm:$0xff] (!%p3307_p1)  }
  0xa2   : > { %1376 = vmatprep.subr.bf16.mxu0 %v3764_v6  ;;  %v3308_v6 = vld [vmem:[%s5131_s12] ss:$0 sm:$0xff] (!%p3307_p1)  ;;  %s5134_s12 = sld [smem:[#allocation22_spill]] (!%p3307_p1) }
  0xa4   : > { %1334 = vmatpush1.bf16.msra.mxu1 %v3766_v7  ;;  %v3827_v7 = vld [vmem:[%s5130_s28 + $0x14] ss:$8 sps:$4 sm:$0xff] (!%p3307_p1)  }
  0xa5   : > { %1377 = vmatpush1.bf16.msra.mxu0 %v3767_v8  ;;  %1335 = vmatprep.subr.bf16.mxu1 %v3768_v9  ;;  %v3829_v8 = vld [vmem:[%s5130_s28 + $0x10] ss:$8 sps:$4 sm:$0xff] (!%p3307_p1)   ;;  %v3830_v9 = vld [vmem:[%s5130_s28 + $0x24] ss:$8 sps:$4 sm:$0xff] (!%p3307_p1)  }
  0xa6   : > { %1378 = vmatprep.subr.bf16.mxu0 %v3770_v10  ;;  %v3820_v10 = vld [vmem:[%s5128_s14 + $0x20] sm:$0xff] (!%p3307_p1)  }
  0xa8   : > { %1336 = vmatpush1.bf16.msra.mxu1 %v3772_v11 }
  0xa9   : > { %1379 = vmatpush1.bf16.msra.mxu0 %v3773_v12  ;;  %1337 = vmatprep.subr.bf16.mxu1 %v3774_v13  ;;  %v3832_v13 = vld [vmem:[%s5130_s28 + $0x20] ss:$8 sps:$4 sm:$0xff] (!%p3307_p1)  }
  0xaa   : > { %1380 = vmatprep.subr.bf16.mxu0 %v3776_v14  ;;  %v3821_v14 = vld [vmem:[%s5128_s14 + $0x28] sm:$0xff] (!%p3307_p1)  }
  0xac   : > { %1338 = vmatpush1.bf16.msra.mxu1 %v3778_v15  ;;  %v3833_v15 = vld [vmem:[%s5130_s28 + $0x34] ss:$8 sps:$4 sm:$0xff] (!%p3307_p1)  }
  0xad   : > { %1381 = vmatpush1.bf16.msra.mxu0 %v3779_v16  ;;  %1339 = vmatprep.subr.bf16.mxu1 %v3780_v17 }
  0xae   : > { %1382 = vmatprep.subr.bf16.mxu0 %v3782_v18  ;;  %v3835_v18 = vld [vmem:[%s5130_s28 + $0x30] ss:$8 sps:$4 sm:$0xff] (!%p3307_p1)  }
  0xb0   : > { %1340 = vmatpush1.bf16.msra.mxu1 %v3784_v19  ;;  %v3836_v19 = vld [vmem:[%s5130_s28 + $0x44] ss:$8 sps:$4 sm:$0xff] (!%p3307_p1)  }
  0xb1   : > { %1383 = vmatpush1.bf16.msra.mxu0 %v3785_v21  ;;  %1341 = vmatprep.subr.bf16.mxu1 %v3786_v22  ;;  %v3838_v21 = vld [vmem:[%s5130_s28 + $0x40] ss:$8 sps:$4 sm:$0xff] (!%p3307_p1)   ;;  %v3839_v22 = vld [vmem:[%s5130_s28 + $0x54] ss:$8 sps:$4 sm:$0xff] (!%p3307_p1)  }
  0xb2   : > { %1384 = vmatprep.subr.bf16.mxu0 %v3788_v23  ;;  %v3823_v23 = vld [vmem:[%s5128_s14 + $0x38] sm:$0xff] (!%p3307_p1)  }
  0xb4   : > { %1342 = vmatpush1.bf16.msra.mxu1 %v3790_v25  ;;  %v3841_v25 = vld [vmem:[%s5130_s28 + $0x50] ss:$8 sps:$4 sm:$0xff] (!%p3307_p1)  }
  0xb5   : > { %1385 = vmatpush1.bf16.msra.mxu0 %v3791_v26  ;;  %1343 = vmatprep.subr.bf16.mxu1 %v3792_v27  ;;  %v3842_v26 = vld [vmem:[%s5130_s28 + $0x64] ss:$8 sps:$4 sm:$0xff] (!%p3307_p1)   ;;  %v3844_v27 = vld [vmem:[%s5130_s28 + $0x60] ss:$8 sps:$4 sm:$0xff] (!%p3307_p1)  }
  0xb6   : > { %1386 = vmatprep.subr.bf16.mxu0 %v3794_v28  ;;  %v3845_v28 = vld [vmem:[%s5130_s28 + $0x74] ss:$8 sps:$4 sm:$0xff] (!%p3307_p1)  }
  0xb8   : > { %1344 = vmatpush1.bf16.msra.mxu1 %v3796_v29  ;;  %v3847_v29 = vld [vmem:[%s5130_s28 + $0x70] ss:$8 sps:$4 sm:$0xff] (!%p3307_p1)  }
  0xb9   : > { %1387 = vmatpush1.bf16.msra.mxu0 %v3797_v30  ;;  %1345 = vmatprep.subr.bf16.mxu1 %v3798_v31  ;;  %v4179_v30 = vmov (!%p3307_p1), 0   ;;  %v3848_v31 = vld [vmem:[%s5132_s19] sm:$0xff] (!%p3307_p1)  }
  0xba   : > { %1388 = vmatprep.subr.bf16.mxu0 %v3800_v32  ;;  %v3309_v32 = vld [vmem:[%s5133_s10] ss:$0 sm:$0xff] (!%p3307_p1) }
  0xbc   : > { %1346 = vmatpush1.bf16.msra.mxu1 %v3802_v33 }
  0xbd   : > { %1389 = vmatpush1.bf16.msra.mxu0 %v3803_v34  ;;  %1347 = vmatprep.subr.bf16.mxu1 %v3804_v35 }
  0xbe   : > { %1390 = vmatprep.subr.bf16.mxu0 %v3806_v36 }
  0xc0   : > { %1348 = vmatpush1.bf16.msra.mxu1 %v3808_v37 }
  0xc1   : > { %1391 = vmatpush1.bf16.msra.mxu0 %v3809_v38  ;;  %1656 = vmatprep.subr.bf16.mxu1 (!%p3307_p1), %v3824_v3 }
  0xc2   : > { %3496 = vmatprep.subr.bf16.mxu0 (!%p3307_p1), %v4177_v62 }
  0xc3   : > { %1350 = vmatmul.mubr.bf16.vlgmr.msra.gmra.mrb[0].mxu1 %v3810_v39 }
  0xc4   : > { %1393 = vmatmul.mubr.bf16.vlgmr.msra.gmra.mrb[0].mxu0 %v3813_v40  ;;  %1657 = vmatpush1.bf16.msra.mxu1 (!%p3307_p1), %v3826_v4 }
  0xc5   : > { %3497 = vmatpush3.bf16.msra.mxu0 (!%p3307_p1), %v3816_v61  ;;  %3512 = vmatprep.mubr.msk.bf16.mxu0 (!%p3307_p1), %vm4178_vm0, %v4177_v62 }
  0xc6   : > { %3498 = vmatprep.subr.bf16.mxu0 (!%p3307_p1), %v4177_v62  ;;  %1658 = vmatprep.subr.bf16.mxu1 (!%p3307_p1), %v3827_v7 }
  0xc7   : > { %1688 = vmatprep.mubr.bf16.mxu1 (!%p3307_p1), %v4179_v30 }
  0xc8   : > { %1659 = vmatpush1.bf16.msra.mxu1 (!%p3307_p1), %v3829_v8 }
  0xc9   : > { %3499 = vmatpush3.bf16.msra.mxu0 (!%p3307_p1), %v3817_v63  ;;  %1660 = vmatprep.subr.bf16.mxu1 (!%p3307_p1), %v3830_v9  ;;  %v1705_v9 = vld [vmem:[%s5136_s13] sm:$0xff] (!%p3307_p1) }
  0xca   : > { %3500 = vmatprep.subr.bf16.mxu0 (!%p3307_p1), %v4177_v62 }
  0xcc   : > { %1661 = vmatpush1.bf16.msra.mxu1 (!%p3307_p1), %v3832_v13 }
  0xcd   : > { %3501 = vmatpush3.bf16.msra.mxu0 (!%p3307_p1), %v3818_v0  ;;  %1662 = vmatprep.subr.bf16.mxu1 (!%p3307_p1), %v3833_v15 }
  0xce   : > { %3502 = vmatprep.subr.bf16.mxu0 (!%p3307_p1), %v4177_v62 }
  0xd0   : > { %1663 = vmatpush1.bf16.msra.mxu1 (!%p3307_p1), %v3835_v18 }
  0xd1   : > { %3503 = vmatpush3.bf16.msra.mxu0 (!%p3307_p1), %v3819_v1  ;;  %1664 = vmatprep.subr.bf16.mxu1 (!%p3307_p1), %v3836_v19 }
  0xd2   : > { %3504 = vmatprep.subr.bf16.mxu0 (!%p3307_p1), %v4177_v62 }
  0xd4   : > { %1665 = vmatpush1.bf16.msra.mxu1 (!%p3307_p1), %v3838_v21 }
  0xd5   : > { %3505 = vmatpush3.bf16.msra.mxu0 (!%p3307_p1), %v3820_v10  ;;  %1666 = vmatprep.subr.bf16.mxu1 (!%p3307_p1), %v3839_v22 }
  0xd6   : > { %3506 = vmatprep.subr.bf16.mxu0 (!%p3307_p1), %v4177_v62 }
  0xd8   : > { %1667 = vmatpush1.bf16.msra.mxu1 (!%p3307_p1), %v3841_v25 }
  0xd9   : > { %3507 = vmatpush3.bf16.msra.mxu0 (!%p3307_p1), %v3821_v14  ;;  %1668 = vmatprep.subr.bf16.mxu1 (!%p3307_p1), %v3842_v26 }
  0xda   : > { %3508 = vmatprep.subr.bf16.mxu0 (!%p3307_p1), %v4177_v62 }
  0xdc   : > { %1669 = vmatpush1.bf16.msra.mxu1 (!%p3307_p1), %v3844_v27 }
  0xdd   : > { %3509 = vmatpush3.bf16.msra.mxu0 (!%p3307_p1), %v3822_v20  ;;  %1670 = vmatprep.subr.bf16.mxu1 (!%p3307_p1), %v3845_v28 }
  0xde   : > { %3510 = vmatprep.subr.bf16.mxu0 (!%p3307_p1), %v4177_v62 }
  0xe0   : > { %1671 = vmatpush1.bf16.msra.mxu1 (!%p3307_p1), %v3847_v29 }
  0xe1   : > { %3511 = vmatpush3.bf16.msra.mxu0 (!%p3307_p1), %v3823_v23  ;;  %3536 = vmatprep.subr.bf16.mxu1 (!%p3307_p1), %v4177_v62 }
  0xe2   : > { %3516 = vmatprep.subr.bf16.mxu0 (!%p3307_p1), %v4177_v62 }
 0x196   : > { %v1351_v41 = vpop.f32.mrb[0].mxu1 }
 0x197   : > { %v1394_v43 = vpop.f32.mrb[0].mxu0  ;;  %v1353_v45 = vpop.f32.mrb[1].mxu1 }
 0x198   : > { %v1395_v44 = vadd.f32 %v1394_v43, %v1351_v41  ;;  %v1396_v47 = vpop.f32.mrb[1].mxu0  ;;  %v1355_v49 = vpop.f32.mrb[2].mxu1 }
 0x199   : > { %v1397_v48 = vadd.f32 %v1396_v47, %v1353_v45  ;;  %v1398_v51 = vpop.f32.mrb[2].mxu0  ;;  %v1357_v54 = vpop.f32.mrb[3].mxu1  ;;  %1414 = sbr.rel (%p3307_p1) target bundleno = 1807 (0x70f), region = 150  ;;  %v3850_v47 = vld [vmem:[%s5132_s19 + $0x10] sm:$0xff] (!%p3307_p1)  }
 0x19a   : > { %v1403_v52 = vadd.f32 %v1395_v44, %v905_v42  ;;  %v1399_v53 = vadd.f32 %v1398_v51, %v1355_v49  ;;  %v1400_v56 = vpop.f32.mrb[3].mxu0  ;;  %v3852_v49 = vld [vmem:[%s5132_s19 + $0x20] sm:$0xff] (!%p3307_p1)   ;;  %v3854_v51 = vld [vmem:[%s5132_s19 + $0x30] sm:$0xff] (!%p3307_p1)  }
 0x19b   : > { %v1404_v57 = vadd.f32 %v1397_v48, %v906_v46  ;;  %v1401_v58 = vadd.f32 %v1400_v56, %v1357_v54  ;;  %v3849_v46 = vld [vmem:[%s5132_s19 + $0x8] sm:$0xff] (!%p3307_p1)   ;;  %v3851_v48 = vld [vmem:[%s5132_s19 + $0x18] sm:$0xff] (!%p3307_p1)   ;;  %v1564_v56 = vld [vmem:[%s5134_s12] sm:$0x3] (!%p3307_p1)  ;;  %s5137_s12 = sld [smem:[#allocation25_spill]] (!%p3307_p1) }
 0x19c   : > { %1407 = vst [vmem:[#allocation2] sm:$0xff] %v1403_v52  ;;  %v1405_v59 = vadd.f32 %v1399_v53, %v907_v50  ;;  %v3853_v50 = vld [vmem:[%s5132_s19 + $0x28] sm:$0xff] (!%p3307_p1)   ;;  %v3855_v52 = vld [vmem:[%s5132_s19 + $0x38] sm:$0xff] (!%p3307_p1)   ;;  %v1566_v53 = vlaneseq (!%p3307_p1) }
 0x19d   : > { %1408 = vst [vmem:[#allocation2 + $0x8] sm:$0xff] %v1404_v57  ;;  %v1406_v60 = vadd.f32 %v1401_v58, %v908_v55 }
 0x19e   : > { %1409 = vst [vmem:[#allocation2 + $0x10] sm:$0xff] %v1405_v59  ;;  %v1567_v54 = vshrl.u32 (!%p3307_p1), %v1566_v53, 7  ;;  %v1712_v10 = vand.u32 (!%p3307_p1), 127, %v1566_v53 }
 0x19f   : > { %1410 = vst [vmem:[#allocation2 + $0x18] sm:$0xff] %v1406_v60 }
 0x1a0   : > { %v1568_v55 = vsub.s32 0, %v1567_v54  ;;  %v1572_v57 = vsub.s32 1, %v1567_v54  ;;  %vm1713_vm1 = vcmp.lt.s32.totalorder %v1712_v10, 20 }
 0x1a1   : > { %v3856_v21 = vld [vmem:[%s5137_s12] sm:$0xff]   ;;  %v3857_v22 = vld [vmem:[%s5137_s12 + $0x8] sm:$0xff]   ;;  %v3858_v23 = vld [vmem:[%s5137_s12 + $0x10] sm:$0xff]  }
 0x1a2   : > { %v1569_v58 = vrot.slane %v1564_v56, %v1568_v55  ;;  %v1573_v59 = vrot.slane %v1564_v56, %v1572_v57  ;;  %v3860_v25 = vld [vmem:[%s5137_s12 + $0x20] sm:$0xff]   ;;  %v3861_v26 = vld [vmem:[%s5137_s12 + $0x28] sm:$0xff]   ;;  %v3862_v27 = vld [vmem:[%s5137_s12 + $0x30] sm:$0xff]  }
 0x1a3   : > { %v1415_v2 = vld [vmem:[#allocation2] sm:$0xff]  ;;  %v3863_v28 = vld [vmem:[%s5137_s12 + $0x38] sm:$0xff]  }
 0x1a4   : > { %v1426_v11 = vadd.f32 %v3308_v6, %v1415_v2  ;;  %v1416_v40 = vld [vmem:[#allocation2 + $0x8] sm:$0xff]  ;;  %v3868_v57 = vld [vmem:[%s5138_s6 + $0x20] sm:$0xff]  }
 0x1a5   : > { %v1417_v5 = vld [vmem:[#allocation2 + $0x10] sm:$0xff] }
 0x1a6   : > { %v1427_v12 = vadd.f32 %v3308_v6, %v1417_v5  ;;  %v1428_v16 = vmax.f32 %v1426_v11, 0.0  ;;  %v1418_v41 = vld [vmem:[#allocation2 + $0x18] sm:$0xff] }
 0x1a8   : > { %v1429_v17 = vmax.f32 %v1427_v12, 0.0  ;;  %v1706_v12 = vld [vmem:[%s5136_s13 + $0x8] sm:$0xff]  ;;  %s5140_s13 = sld [smem:[#allocation29_spill]] }
 0x1aa   : > { %v1430_v24 = vpack.c.bf16 %v1429_v17, %v1428_v16 }
 0x1ac   : > { %3513 = vmatmul.mubr.bf16.vlgmr.msra.gmra.mrb[0].mxu0 %v1430_v24  ;;  %v3859_v24 = vld [vmem:[%s5137_s12 + $0x18] sm:$0xff]  }
 0x1ad   : > { %3532 = vmatprep.mubr.msk.bf16.mxu0 %vm4178_vm0, %v4177_v62  ;;  %3517 = vmatpush3.bf16.msra.mxu0 %v3848_v31 }
 0x1ae   : > { %3518 = vmatprep.subr.bf16.mxu0 %v4177_v62 }
 0x1b1   : > { %3519 = vmatpush3.bf16.msra.mxu0 %v3849_v46 }
 0x1b2   : > { %3520 = vmatprep.subr.bf16.mxu0 %v4177_v62 }
 0x1b5   : > { %3521 = vmatpush3.bf16.msra.mxu0 %v3850_v47 }
 0x1b6   : > { %3522 = vmatprep.subr.bf16.mxu0 %v4177_v62 }
 0x1b9   : > { %3523 = vmatpush3.bf16.msra.mxu0 %v3851_v48 }
 0x1ba   : > { %3524 = vmatprep.subr.bf16.mxu0 %v4177_v62 }
 0x1bd   : > { %3525 = vmatpush3.bf16.msra.mxu0 %v3852_v49 }
 0x1be   : > { %3526 = vmatprep.subr.bf16.mxu0 %v4177_v62 }
 0x1c1   : > { %3527 = vmatpush3.bf16.msra.mxu0 %v3853_v50 }
 0x1c2   : > { %3528 = vmatprep.subr.bf16.mxu0 %v4177_v62 }
 0x1c5   : > { %3529 = vmatpush3.bf16.msra.mxu0 %v3854_v51 }
 0x1c6   : > { %3530 = vmatprep.subr.bf16.mxu0 %v4177_v62 }
 0x1c9   : > { %3531 = vmatpush3.bf16.msra.mxu0 %v3855_v52 }
 0x1ca   : > { %3556 = vmatprep.subr.bf16.mxu0 %v4177_v62 }
 0x27f   : > { %v1536_v33 = vpop.f32.mrb[0].mxu0 }
 0x280   : > { %v1537_v34 = vadd.f32 %v3309_v32, %v1536_v33  ;;  %v3514_v35 = vpop.f32.mrb[1].mxu0 }
 0x281   : > { %v1539_v36 = vpop.f32.mrb[2].mxu0 }
 0x282   : > { %v1543_v37 = vmax.f32 %v1537_v34, 0.0  ;;  %v1540_v38 = vadd.f32 %v3309_v32, %v1539_v36  ;;  %v3515_v39 = vpop.f32.mrb[3].mxu0 }
 0x283   : > { %v3866_v39 = vld [vmem:[%s5138_s6 + $0x10] sm:$0xff]  }
 0x284   : > { %v1544_v42 = vmax.f32 %v1540_v38, 0.0  ;;  %v1545_v43 = vadd.f32 %v1543_v37, %v1416_v40  ;;  %v3864_v37 = vld [vmem:[%s5138_s6] sm:$0xff]   ;;  %v3865_v38 = vld [vmem:[%s5138_s6 + $0x8] sm:$0xff]   ;;  %v3867_v40 = vld [vmem:[%s5138_s6 + $0x18] sm:$0xff]  }
 0x286   : > { %v1546_v44 = vadd.f32 %v1544_v42, %v1418_v41  ;;  %v3334_v41 = vld [vmem:[%s5139_s3] ss:$0 sm:$0xff] }
 0x288   : > { %v1547_v45 = vpack.c.bf16 %v1546_v44, %v1545_v43 }
 0x28a   : > { %1689 = vmatmul.mubr.bf16.vlgmr.msra.gmra.mrb[0].mxu1 %v1547_v45 }
 0x28b   : > { %3552 = vmatprep.mubr.msk.bf16.mxu1 %vm4178_vm0, %v4177_v62  ;;  %3537 = vmatpush3.bf16.msra.mxu1 %v3856_v21 }
 0x28c   : > { %3538 = vmatprep.subr.bf16.mxu1 %v4177_v62 }
 0x28f   : > { %3539 = vmatpush3.bf16.msra.mxu1 %v3857_v22 }
 0x290   : > { %3540 = vmatprep.subr.bf16.mxu1 %v4177_v62 }
 0x293   : > { %3541 = vmatpush3.bf16.msra.mxu1 %v3858_v23 }
 0x294   : > { %3542 = vmatprep.subr.bf16.mxu1 %v4177_v62 }
 0x297   : > { %3543 = vmatpush3.bf16.msra.mxu1 %v3859_v24 }
 0x298   : > { %3544 = vmatprep.subr.bf16.mxu1 %v4177_v62 }
 0x29b   : > { %3545 = vmatpush3.bf16.msra.mxu1 %v3860_v25 }
 0x29c   : > { %3546 = vmatprep.subr.bf16.mxu1 %v4177_v62 }
 0x29f   : > { %3547 = vmatpush3.bf16.msra.mxu1 %v3861_v26 }
 0x2a0   : > { %3548 = vmatprep.subr.bf16.mxu1 %v4177_v62 }
 0x2a3   : > { %3549 = vmatpush3.bf16.msra.mxu1 %v3862_v27 }
 0x2a4   : > { %3550 = vmatprep.subr.bf16.mxu1 %v4177_v62 }
 0x2a7   : > { %3551 = vmatpush3.bf16.msra.mxu1 %v3863_v28 }
 0x2a8   : > { %3576 = vmatprep.subr.bf16.mxu1 %v4177_v62 }
 0x35d   : > { %v1690_v60 = vpop.f32.mrb[0].mxu1 }
 0x35e   : > { %v1691_v61 = vadd.f32 %v1690_v60, %v1569_v58  ;;  %v1692_v63 = vpop.f32.mrb[1].mxu1  ;;  %v3871_v60 = vld [vmem:[%s5138_s6 + $0x38] sm:$0xff]  }
 0x35f   : > { %v1693_v0 = vadd.f32 %v1692_v63, %v1573_v59  ;;  %v1694_v1 = vpop.f32.mrb[2].mxu1  ;;  %v3873_v63 = vld [vmem:[%s5140_s13 + $0x8] sm:$0xff]  }
 0x360   : > { %2198 = vst [vmem:[%s5135_s11] sm:$0xff] %v1691_v61  ;;  %v1695_v2 = vadd.f32 %v1694_v1, %v1569_v58  ;;  %v1696_v3 = vpop.f32.mrb[3].mxu1  ;;  %v3869_v58 = vld [vmem:[%s5138_s6 + $0x28] sm:$0xff]   ;;  %v3875_v1 = vld [vmem:[%s5140_s13 + $0x18] sm:$0xff]  }
 0x361   : > { %v1699_v4 = vmul.f32 0.5, %v1693_v0  ;;  %2199 = vst [vmem:[%s5135_s11 + $0x8] sm:$0xff] %v1693_v0  ;;  %v1697_v5 = vadd.f32 %v1696_v3, %v1573_v59  ;;  %v3870_v59 = vld [vmem:[%s5138_s6 + $0x30] sm:$0xff]   ;;  %s5142_s6 = sld [smem:[#allocation28_spill]] }
 0x362   : > { %2203 = vst [vmem:[%s5135_s11 + $0x28] sm:$0xff] %v1695_v2  ;;  %v3874_v0 = vld [vmem:[%s5140_s13 + $0x10] sm:$0xff]  }
 0x363   : > { %v1701_v6 = vmul.f32 1.442695, %v1699_v4  ;;  %v1700_v7 = vmul.f32 0.5, %v1697_v5  ;;  %2204 = vst [vmem:[%s5135_s11 + $0x30] sm:$0xff] %v1697_v5 }
 0x365   : > { %3880 = vpow2.f32 %v1701_v6  ;;  %v1703_v8 = vmul.f32 1.442695, %v1700_v7 }
 0x367   : > { %3882 = vpow2.f32 %v1703_v8 }
 0x36f   : > { %v3881_v11 = vpop.eup %3880 }
 0x370   : > { %v1707_v13 = vmul.f32 %v3881_v11, %v1705_v9 }
 0x371   : > { %v3883_v14 = vpop.eup %3882 }
 0x372   : > { %v1708_v15 = vmul.f32 %v3883_v14, %v1706_v12  ;;  %v4741_v16 = vadd.f32 %v1707_v13, %v1691_v61  ;;  %v3872_v61 = vld [vmem:[%s5140_s13] sm:$0xff]   ;;  %v3877_v13 = vld [vmem:[%s5140_s13 + $0x28] sm:$0xff]   ;;  %v3878_v14 = vld [vmem:[%s5140_s13 + $0x30] sm:$0xff]  }
 0x373   : > { %v3876_v12 = vld [vmem:[%s5140_s13 + $0x20] sm:$0xff]  }
 0x374   : > { %v1714_v17 = vsel %vm1713_vm1, %v4741_v16, -1e+30  ;;  %2200 = vst [vmem:[%s5135_s11 + $0x10] sm:$0xff] %v4741_v16  ;;  %v4748_v18 = vadd.f32 %v1708_v15, %v1695_v2  ;;  %v3343_v2 = vld [vmem:[%s5141_s7] ss:$0 sm:$0xff]  ;;  %v3879_v15 = vld [vmem:[%s5140_s13 + $0x38] sm:$0xff]  }
 0x375   : > { %1716 = vmax.xlane.f32.xlu0 %v1714_v17 }
 0x376   : > { %v1734_v19 = vpack.c.bf16 %v4748_v18, %v4741_v16  ;;  %2205 = vst [vmem:[%s5135_s11 + $0x38] sm:$0xff] %v4748_v18  ;;  %v1715_v20 = vsel %vm1713_vm1, %v4748_v18, -1e+30 }
 0x378   : > { %3533 = vmatmul.mubr.bf16.vlgmr.msra.gmra.mrb[4].mxu0 %v1734_v19 }
 0x379   : > { %1718 = vmax.xlane.f32.xlu0 %v1715_v20  ;;  %3572 = vmatprep.mubr.msk.bf16.mxu0 %vm4178_vm0, %v4177_v62 }
 0x37a   : > { %3557 = vmatpush3.bf16.msra.mxu0 %v3864_v37 }
 0x37b   : > { %3558 = vmatprep.subr.bf16.mxu0 %v4177_v62 }
 0x37e   : > { %3559 = vmatpush3.bf16.msra.mxu0 %v3865_v38 }
 0x37f   : > { %3560 = vmatprep.subr.bf16.mxu0 %v4177_v62 }
 0x382   : > { %3561 = vmatpush3.bf16.msra.mxu0 %v3866_v39 }
 0x383   : > { %3562 = vmatprep.subr.bf16.mxu0 %v4177_v62 }
 0x386   : > { %3563 = vmatpush3.bf16.msra.mxu0 %v3867_v40 }
 0x387   : > { %3564 = vmatprep.subr.bf16.mxu0 %v4177_v62 }
 0x38a   : > { %3565 = vmatpush3.bf16.msra.mxu0 %v3868_v57 }
 0x38b   : > { %3566 = vmatprep.subr.bf16.mxu0 %v4177_v62 }
 0x38e   : > { %3567 = vmatpush3.bf16.msra.mxu0 %v3869_v58 }
 0x38f   : > { %3568 = vmatprep.subr.bf16.mxu0 %v4177_v62 }
 0x392   : > { %3569 = vmatpush3.bf16.msra.mxu0 %v3870_v59 }
 0x393   : > { %3570 = vmatprep.subr.bf16.mxu0 %v4177_v62 }
 0x396   : > { %3571 = vmatpush3.bf16.msra.mxu0 %v3871_v60 }
 0x402   : > { %v1717_v29 = vpop.xlane.xlu0 %1716 }
 0x403   : > { %v1720_v30 = vsub.f32 %v1714_v17, %v1717_v29  ;;  %v3352_v17 = vld [vmem:[%s5142_s6] ss:$0 sm:$0xff] }
 0x405   : > { %v1722_v31 = vmul.f32 1.442695, %v1720_v30 }
 0x406   : > { %v1719_v32 = vpop.xlane.xlu0 %1718 }
 0x407   : > { %3884 = vpow2.f32 %v1722_v31  ;;  %v1721_v33 = vsub.f32 %v1715_v20, %v1719_v32 }
 0x409   : > { %v1724_v34 = vmul.f32 1.442695, %v1721_v33 }
 0x40b   : > { %3886 = vpow2.f32 %v1724_v34 }
 0x411   : > { %v3885_v35 = vpop.eup %3884 }
 0x412   : > { %1726 = vadd.xlane.f32.xlu1 %v3885_v35 }
 0x415   : > { %v3887_v36 = vpop.eup %3886 }
 0x416   : > { %1728 = vadd.xlane.f32.xlu1 %v3887_v36 }
 0x44b   : > { %v1840_v42 = vpop.f32.mrb[4].mxu0 }
 0x44c   : > { %v1841_v43 = vadd.f32 %v3334_v41, %v1840_v42  ;;  %v3534_v44 = vpop.f32.mrb[5].mxu0 }
 0x44d   : > { %v1843_v45 = vpop.f32.mrb[6].mxu0 }
 0x44e   : > { %v1844_v46 = vadd.f32 %v3334_v41, %v1843_v45  ;;  %v3535_v47 = vpop.f32.mrb[7].mxu0  ;;  %3888 = vtanh.f32 %v1841_v43 }
 0x450   : > { %3890 = vtanh.f32 %v1844_v46 }
 0x458   : > { %v3889_v48 = vpop.eup %3888 }
 0x45a   : > { %v3891_v49 = vpop.eup %3890 }
 0x45b   : > { %v1849_v50 = vpack.c.bf16 %v3891_v49, %v3889_v48 }
 0x45d   : > { %3553 = vmatmul.mubr.bf16.vlgmr.msra.gmra.mrb[4].mxu1 %v1849_v50 }
 0x45e   : > { %3592 = vmatprep.mubr.msk.bf16.mxu1 %vm4178_vm0, %v4177_v62  ;;  %3577 = vmatpush3.bf16.msra.mxu1 %v3872_v61 }
 0x45f   : > { %3578 = vmatprep.subr.bf16.mxu1 %v4177_v62 }
 0x462   : > { %3579 = vmatpush3.bf16.msra.mxu1 %v3873_v63 }
 0x463   : > { %3580 = vmatprep.subr.bf16.mxu1 %v4177_v62 }
 0x466   : > { %3581 = vmatpush3.bf16.msra.mxu1 %v3874_v0 }
 0x467   : > { %3582 = vmatprep.subr.bf16.mxu1 %v4177_v62 }
 0x46a   : > { %3583 = vmatpush3.bf16.msra.mxu1 %v3875_v1 }
 0x46b   : > { %3584 = vmatprep.subr.bf16.mxu1 %v4177_v62 }
 0x46e   : > { %3585 = vmatpush3.bf16.msra.mxu1 %v3876_v12 }
 0x46f   : > { %3586 = vmatprep.subr.bf16.mxu1 %v4177_v62 }
 0x472   : > { %3587 = vmatpush3.bf16.msra.mxu1 %v3877_v13 }
 0x473   : > { %3588 = vmatprep.subr.bf16.mxu1 %v4177_v62 }
 0x476   : > { %3589 = vmatpush3.bf16.msra.mxu1 %v3878_v14 }
 0x477   : > { %3590 = vmatprep.subr.bf16.mxu1 %v4177_v62  ;;  %v3361_v62 = vld [vmem:[%s5143_s21] ss:$0 sm:$0xff] }
 0x47a   : > { %3591 = vmatpush3.bf16.msra.mxu1 %v3879_v15 }
 0x49f   : > { %v1727_v51 = vpop.xlane.xlu1 %1726 }
 0x4a0   : > { %3892 = vrcp.f32 %v1727_v51 }
 0x4a3   : > { %v1729_v52 = vpop.xlane.xlu1 %1728 }
 0x4a4   : > { %3894 = vrcp.f32 %v1729_v52 }
 0x4aa   : > { %v3893_v53 = vpop.eup %3892 }
 0x4ab   : > { %v1731_v54 = vmul.f32 %v3893_v53, %v3885_v35 }
 0x4ad   : > { %2201 = vst [vmem:[%s5135_s11 + $0x18] sm:$0xff] %v1731_v54 }
 0x4ae   : > { %v3895_v55 = vpop.eup %3894 }
 0x4af   : > { %v1733_v56 = vmul.f32 %v3895_v55, %v3887_v36 }
 0x4b1   : > { %2206 = vst [vmem:[%s5135_s11 + $0x40] sm:$0xff] %v1733_v56 }
 0x530   : > { %v1955_v3 = vpop.f32.mrb[4].mxu1 }
 0x531   : > { %v1956_v4 = vadd.f32 %v3343_v2, %v1955_v3  ;;  %v3554_v5 = vpop.f32.mrb[5].mxu1 }
 0x532   : > { %v1958_v6 = vpop.f32.mrb[6].mxu1 }
 0x533   : > { %v1959_v7 = vadd.f32 %v3343_v2, %v1958_v6  ;;  %v3555_v8 = vpop.f32.mrb[7].mxu1  ;;  %3896 = vtanh.f32 %v1956_v4 }
 0x535   : > { %3898 = vtanh.f32 %v1959_v7 }
 0x53d   : > { %v3897_v9 = vpop.eup %3896 }
 0x53f   : > { %v3899_v10 = vpop.eup %3898 }
 0x540   : > { %v1964_v11 = vpack.c.bf16 %v3899_v10, %v3897_v9 }
 0x542   : > { %3573 = vmatmul.mubr.bf16.vlgmr.msra.gmra.mrb[8].mxu0 %v1964_v11 }
 0x615   : > { %v2070_v19 = vpop.f32.mrb[8].mxu0 }
 0x616   : > { %v2071_v20 = vadd.f32 %v3352_v17, %v2070_v19  ;;  %v3574_v21 = vpop.f32.mrb[9].mxu0 }
 0x617   : > { %v2073_v22 = vpop.f32.mrb[10].mxu0 }
 0x618   : > { %v2074_v23 = vadd.f32 %v3352_v17, %v2073_v22  ;;  %v3575_v24 = vpop.f32.mrb[11].mxu0  ;;  %3900 = vtanh.f32 %v2071_v20 }
 0x61a   : > { %3902 = vtanh.f32 %v2074_v23 }
 0x622   : > { %v3901_v25 = vpop.eup %3900 }
 0x624   : > { %v3903_v26 = vpop.eup %3902 }
 0x625   : > { %v2079_v27 = vpack.c.bf16 %v3903_v26, %v3901_v25 }
 0x627   : > { %3593 = vmatmul.mubr.bf16.vlgmr.msra.gmra.mrb[8].mxu1 %v2079_v27 }
 0x6fa   : > { %v2185_v28 = vpop.f32.mrb[8].mxu1 }
 0x6fb   : > { %v2186_v29 = vadd.f32 %v3361_v62, %v2185_v28  ;;  %v3594_v30 = vpop.f32.mrb[9].mxu1 }
 0x6fc   : > { %v2188_v31 = vpop.f32.mrb[10].mxu1 }
 0x6fd   : > { %3904 = vtanh.f32 %v2186_v29  ;;  %v2189_v32 = vadd.f32 %v3361_v62, %v2188_v31  ;;  %v3595_v33 = vpop.f32.mrb[11].mxu1 }
 0x6ff   : > { %3906 = vtanh.f32 %v2189_v32 }
 0x707   : > { %v3905_v34 = vpop.eup %3904 }
 0x708   : > { %v2194_v35 = vadd.f32 %v3905_v34, %v4741_v16 }
 0x709   : > { %v3907_v36 = vpop.eup %3906 }
 0x70a   : > { %2202 = vst [vmem:[%s5135_s11 + $0x20] sm:$0xff] %v2194_v35  ;;  %v2195_v37 = vadd.f32 %v3907_v36, %v4748_v18 }
 0x70c   : > { %v2196_v38 = vpack.c.bf16 %v2195_v37, %v2194_v35  ;;  %2207 = vst [vmem:[%s5135_s11 + $0x48] sm:$0xff] %v2195_v37 }
 0x70e   : > { %2197 = vst [vmem:[#allocation3] sm:$0xff] %v2196_v38 }
 0x70f PF: > { %p3370_p2 = scmp.ne.s32.totalorder %s4162_s24, 1 }
 0x710   : > { %p3371_p4 = scmp.ne.s32.totalorder (!%p3370_p2), %s4158_s23, 0 }
 0x711   : > { %2211 = sbr.rel (%p3370_p2) target bundleno = 2540 (0x9ec), region = 154 }
 0x718   : > { %2215 = sbr.rel (%p3371_p4) target bundleno = 1823 (0x71f), region = 158  ;;  %vm2216_vm2 = vcmask (!%p3371_p4), 7168   ;;  %v4180_v16 = vmov (!%p3371_p4), -inf   ;;  %v4181_v39 = vmov (!%p3371_p4), 0.0  }
 0x719   : > { %2217 = vst.msk [vmem:[#allocation4] sm:$0xff] (!%p3371_p4), %vm2216_vm2, %v4180_v16  ;;  %2218 = vst.msk [vmem:[#allocation4 + $0x8] sm:$0xff] (!%p3371_p4), %vm2216_vm2, %v4180_v16 }
 0x71a   : > { %2219 = vst.msk [vmem:[#allocation5] sm:$0xff] (!%p3371_p4), %vm2216_vm2, %v4181_v39  ;;  %2220 = vst.msk [vmem:[#allocation5 + $0x8] sm:$0xff] (!%p3371_p4), %vm2216_vm2, %v4181_v39 }
 0x71f PF: > { %v3910_v18 = vld [vmem:[%s4519_s25 + $0x4] ss:$16 sps:$4 sm:$0xff]   ;;  %v3912_v40 = vld [vmem:[%s4519_s25 + $0xc] ss:$16 sps:$4 sm:$0xff]   ;;  %v4182_v41 = vmov 0   ;;  %v2256_v10 = vlaneseq  ;;  %s3404_s3 = sshll.u32 %s4158_s23, 9 }
 0x720   : > { %2468 = vmatprep.mubr.bf16.mxu0 %v4182_v41  ;;  %2511 = vmatprep.mubr.bf16.mxu1 %v4182_v41  ;;  %v3914_v42 = vld [vmem:[%s4519_s25] ss:$16 sps:$4 sm:$0xff]   ;;  %v3915_v43 = vld [vmem:[%s4519_s25 + $0x8] ss:$16 sps:$4 sm:$0xff]   ;;  %v3916_v44 = vld [vmem:[%s4519_s25 + $0x24] ss:$16 sps:$4 sm:$0xff]   ;;  %v2528_v15 = vstv %s3404_s3 }
 0x721   : > { %2436 = vmatprep.subr.bf16.mxu0 %v3910_v18  ;;  %3908 = vset.pattern.permute.xlu1 %v4182_v41  ;;  %v3918_v45 = vld [vmem:[%s4519_s25 + $0x2c] ss:$16 sps:$4 sm:$0xff]   ;;  %v3920_v46 = vld [vmem:[%s4519_s25 + $0x20] ss:$16 sps:$4 sm:$0xff]   ;;  %v3921_v47 = vld [vmem:[%s4519_s25 + $0x28] ss:$16 sps:$4 sm:$0xff]  }
 0x722   : > { %2479 = vmatprep.subr.bf16.mxu1 %v3912_v40  ;;  %3909 = vset.pattern.permute.xlu0 %v4182_v41  ;;  %v3922_v48 = vld [vmem:[%s4519_s25 + $0x44] ss:$16 sps:$4 sm:$0xff]   ;;  %v3924_v49 = vld [vmem:[%s4519_s25 + $0x4c] ss:$16 sps:$4 sm:$0xff]   ;;  %v3926_v50 = vld [vmem:[%s4519_s25 + $0x40] ss:$16 sps:$4 sm:$0xff]  }
 0x723   : > { %2437 = vmatpush1.bf16.msra.mxu0 %v3914_v42  ;;  %2480 = vmatpush1.bf16.msra.mxu1 %v3915_v43  ;;  %v3927_v51 = vld [vmem:[%s4519_s25 + $0x48] ss:$16 sps:$4 sm:$0xff]   ;;  %v3928_v52 = vld [vmem:[%s4519_s25 + $0x64] ss:$16 sps:$4 sm:$0xff]   ;;  %v3930_v53 = vld [vmem:[%s4519_s25 + $0x6c] ss:$16 sps:$4 sm:$0xff]  }
 0x724   : > { %2438 = vmatprep.subr.bf16.mxu0 %v3916_v44  ;;  %2481 = vmatprep.subr.bf16.mxu1 %v3918_v45  ;;  %v3932_v54 = vld [vmem:[%s4519_s25 + $0x60] ss:$16 sps:$4 sm:$0xff]   ;;  %v3933_v55 = vld [vmem:[%s4519_s25 + $0x68] ss:$16 sps:$4 sm:$0xff]   ;;  %v3934_v56 = vld [vmem:[%s4519_s25 + $0x84] ss:$16 sps:$4 sm:$0xff]  }
 0x725   : > { %v3936_v57 = vld [vmem:[%s4519_s25 + $0x8c] ss:$16 sps:$4 sm:$0xff]   ;;  %v3938_v58 = vld [vmem:[%s4519_s25 + $0x80] ss:$16 sps:$4 sm:$0xff]   ;;  %v3939_v59 = vld [vmem:[%s4519_s25 + $0x88] ss:$16 sps:$4 sm:$0xff]  }
 0x726   : > { %v3940_v60 = vld [vmem:[%s4519_s25 + $0xa4] ss:$16 sps:$4 sm:$0xff]   ;;  %v3942_v61 = vld [vmem:[%s4519_s25 + $0xac] ss:$16 sps:$4 sm:$0xff]   ;;  %v3944_v63 = vld [vmem:[%s4519_s25 + $0xa0] ss:$16 sps:$4 sm:$0xff]  }
 0x727   : > { %2439 = vmatpush1.bf16.msra.mxu0 %v3920_v46  ;;  %2482 = vmatpush1.bf16.msra.mxu1 %v3921_v47  ;;  %v3945_v0 = vld [vmem:[%s4519_s25 + $0xa8] ss:$16 sps:$4 sm:$0xff]   ;;  %v3946_v1 = vld [vmem:[%s4519_s25 + $0xc4] ss:$16 sps:$4 sm:$0xff]   ;;  %v3948_v2 = vld [vmem:[%s4519_s25 + $0xcc] ss:$16 sps:$4 sm:$0xff]  }
 0x728   : > { %2440 = vmatprep.subr.bf16.mxu0 %v3922_v48  ;;  %2483 = vmatprep.subr.bf16.mxu1 %v3924_v49  ;;  %v3950_v3 = vld [vmem:[%s4519_s25 + $0xc0] ss:$16 sps:$4 sm:$0xff]   ;;  %v3951_v4 = vld [vmem:[%s4519_s25 + $0xc8] ss:$16 sps:$4 sm:$0xff]   ;;  %v3952_v5 = vld [vmem:[%s4519_s25 + $0xe4] ss:$16 sps:$4 sm:$0xff]  }
 0x729   : > { %v3954_v6 = vld [vmem:[%s4519_s25 + $0xec] ss:$16 sps:$4 sm:$0xff]   ;;  %v3956_v7 = vld [vmem:[%s4519_s25 + $0xe0] ss:$16 sps:$4 sm:$0xff]   ;;  %v3957_v8 = vld [vmem:[%s4519_s25 + $0xe8] ss:$16 sps:$4 sm:$0xff]  }
 0x72a   : > { %v2221_v9 = vld [vmem:[#allocation3] sm:$0xff]  ;;  %v2257_v11 = vshrl.u32 %v2256_v10, 7  ;;  %v2523_v12 = vand.u32 127, %v2256_v10  ;;  %vm2615_vm7 = vcmask 7168   ;;  %p3405_p7 = scmp.ne.s32.totalorder %s4158_s23, 1 }
 0x72b   : > { %2441 = vmatpush1.bf16.msra.mxu0 %v3926_v50  ;;  %2484 = vmatpush1.bf16.msra.mxu1 %v3927_v51  ;;  %v2254_v21 = vld [vmem:[%s4515_s18] sm:$0xf] }
 0x72c   : > { %2442 = vmatprep.subr.bf16.mxu0 %v3928_v52  ;;  %2485 = vmatprep.subr.bf16.mxu1 %v3930_v53  ;;  %v2258_v13 = vsub.s32 0, %v2257_v11  ;;  %v2525_v14 = vadd.s32 256, %v2523_v12  ;;  %v2266_v17 = vsub.s32 2, %v2257_v11  ;;  %v2524_v19 = vadd.s32 128, %v2523_v12 }
 0x72d   : > { %v2526_v20 = vadd.s32 384, %v2523_v12  ;;  %v2262_v22 = vsub.s32 1, %v2257_v11  ;;  %v2270_v23 = vsub.s32 3, %v2257_v11  ;;  %v2529_v24 = vadd.s32 %v2528_v15, %v2523_v12 }
 0x72e   : > { %v2531_v25 = vadd.s32 %v2528_v15, %v2525_v14  ;;  %v2259_v26 = vrot.slane %v2254_v21, %v2258_v13  ;;  %v2267_v27 = vrot.slane %v2254_v21, %v2266_v17  ;;  %v2530_v62 = vadd.s32 %v2528_v15, %v2524_v19 }
 0x72f   : > { %2443 = vmatpush1.bf16.msra.mxu0 %v3932_v54  ;;  %2486 = vmatpush1.bf16.msra.mxu1 %v3933_v55  ;;  %v2532_v28 = vadd.s32 %v2528_v15, %v2526_v20  ;;  %v2263_v29 = vrot.slane %v2254_v21, %v2262_v22  ;;  %v2271_v30 = vrot.slane %v2254_v21, %v2270_v23  ;;  %vm2533_vm3 = vcmp.lt.s32.totalorder %v2529_v24, 1000 }
 0x730   : > { %2444 = vmatprep.subr.bf16.mxu0 %v3934_v56  ;;  %2487 = vmatprep.subr.bf16.mxu1 %v3936_v57  ;;  %vm2535_vm4 = vcmp.lt.s32.totalorder %v2531_v25, 1000  ;;  %vm2534_vm5 = vcmp.lt.s32.totalorder %v2530_v62, 1000 }
 0x731   : > { %vm2536_vm6 = vcmp.lt.s32.totalorder %v2532_v28, 1000 }
 0x733   : > { %2445 = vmatpush1.bf16.msra.mxu0 %v3938_v58  ;;  %2488 = vmatpush1.bf16.msra.mxu1 %v3939_v59  ;;  %v2545_v59 = vld [vmem:[#allocation4] sm:$0xff] }
 0x734   : > { %2446 = vmatprep.subr.bf16.mxu0 %v3940_v60  ;;  %2489 = vmatprep.subr.bf16.mxu1 %v3942_v61 }
 0x737   : > { %2447 = vmatpush1.bf16.msra.mxu0 %v3944_v63  ;;  %2490 = vmatpush1.bf16.msra.mxu1 %v3945_v0  ;;  %v2546_v63 = vld [vmem:[#allocation4 + $0x8] sm:$0xff] }
 0x738   : > { %2448 = vmatprep.subr.bf16.mxu0 %v3946_v1  ;;  %2491 = vmatprep.subr.bf16.mxu1 %v3948_v2 }
 0x73b   : > { %2449 = vmatpush1.bf16.msra.mxu0 %v3950_v3  ;;  %2492 = vmatpush1.bf16.msra.mxu1 %v3951_v4 }
 0x73c   : > { %2450 = vmatprep.subr.bf16.mxu0 %v3952_v5  ;;  %2493 = vmatprep.subr.bf16.mxu1 %v3954_v6 }
 0x73f   : > { %2451 = vmatpush1.bf16.msra.mxu0 %v3956_v7  ;;  %2494 = vmatpush1.bf16.msra.mxu1 %v3957_v8 }
 0x742   : > { %2469 = vmatmul.mubr.bf16.vlgmr.msra.gmra.mrb[0].mxu0 %v2221_v9  ;;  %2512 = vmatmul.mubr.bf16.vlgmr.msra.gmra.mrb[0].mxu1 %v2221_v9 }
 0x815   : > { %v2470_v31 = vpop.f32.mrb[0].mxu0  ;;  %v2513_v32 = vpop.f32.mrb[0].mxu1 }
 0x816   : > { %v2471_v33 = vadd.f32 %v2470_v31, %v2259_v26  ;;  %v2514_v34 = vadd.f32 %v2513_v32, %v2267_v27  ;;  %v2472_v35 = vpop.f32.mrb[1].mxu0  ;;  %v2515_v36 = vpop.f32.mrb[1].mxu1 }
 0x817   : > { %v2473_v37 = vadd.f32 %v2472_v35, %v2263_v29  ;;  %v2516_v38 = vadd.f32 %v2515_v36, %v2271_v30  ;;  %v2474_v16 = vpop.f32.mrb[2].mxu0  ;;  %v2517_v39 = vpop.f32.mrb[2].mxu1 }
 0x818   : > { %v2537_v18 = vsel %vm2533_vm3, %v2471_v33, -1e+30  ;;  %v2539_v40 = vsel %vm2535_vm4, %v2514_v34, -1e+30  ;;  %v2475_v41 = vadd.f32 %v2474_v16, %v2259_v26  ;;  %v2518_v42 = vadd.f32 %v2517_v39, %v2267_v27  ;;  %v2476_v43 = vpop.f32.mrb[3].mxu0  ;;  %v2519_v44 = vpop.f32.mrb[3].mxu1 }
 0x819   : > { %v2538_v45 = vsel %vm2534_vm5, %v2473_v37, -1e+30  ;;  %v2540_v46 = vsel %vm2536_vm6, %v2516_v38, -1e+30  ;;  %v2477_v47 = vadd.f32 %v2476_v43, %v2263_v29  ;;  %v2520_v48 = vadd.f32 %v2519_v44, %v2271_v30  ;;  %v2559_v39 = vld [vmem:[#allocation5] sm:$0xff] }
 0x81a   : > { %v2541_v49 = vsel %vm2533_vm3, %v2475_v41, -1e+30  ;;  %v2543_v50 = vsel %vm2535_vm4, %v2518_v42, -1e+30  ;;  %v2547_v51 = vmax.f32 %v2537_v18, %v2539_v40  ;;  %v2548_v52 = vmax.f32 %v2538_v45, %v2540_v46  ;;  %v2560_v42 = vld [vmem:[#allocation5 + $0x8] sm:$0xff] }
 0x81b   : > { %v2542_v53 = vsel %vm2534_vm5, %v2477_v47, -1e+30  ;;  %v2544_v54 = vsel %vm2536_vm6, %v2520_v48, -1e+30  ;;  %v2552_v56 = vmax.f32 %v2541_v49, %v2543_v50 }
 0x81c   : > { %v2549_v55 = vmax.f32 %v2547_v51, %v2548_v52  ;;  %v2553_v57 = vmax.f32 %v2542_v53, %v2544_v54 }
 0x81e   : > { %2550 = vmax.xlane.f32.xlu0 %v2549_v55  ;;  %v2554_v58 = vmax.f32 %v2552_v56, %v2553_v57 }
 0x822   : > { %2555 = vmax.xlane.f32.xlu0 %v2554_v58 }
 0x8ab   : > { %v2551_v60 = vpop.xlane.xlu0 %2550 }
 0x8ac   : > { %v2557_v61 = vmax.f32 %v2545_v59, %v2551_v60 }
 0x8ae   : > { %v2561_v0 = vsub.f32 %v2545_v59, %v2557_v61  ;;  %2618 = vst.msk [vmem:[#allocation4] sm:$0xff] %vm2615_vm7, %v2557_v61  ;;  %2571 = vperm.xlu1 %3908, %v2557_v61  }
 0x8af   : > { %v2556_v1 = vpop.xlane.xlu0 %2555 }
 0x8b0   : > { %v2558_v2 = vmax.f32 %v2546_v63, %v2556_v1  ;;  %v2563_v37 = vmul.f32 1.442695, %v2561_v0 }
 0x8b2   : > { %v2562_v3 = vsub.f32 %v2546_v63, %v2558_v2  ;;  %2619 = vst.msk [vmem:[#allocation4 + $0x8] sm:$0xff] %vm2615_vm7, %v2558_v2  ;;  %2576 = vperm.xlu1 %3908, %v2558_v2  }
 0x8b4   : > { %v2565_v38 = vmul.f32 1.442695, %v2562_v3 }
 0x92d   : > { %v2572_v4 = vpop.permute.xlu1 %2571 }
 0x92e   : > { %v2579_v5 = vsub.f32 %v2537_v18, %v2572_v4  ;;  %v2580_v6 = vsub.f32 %v2538_v45, %v2572_v4  ;;  %v2581_v7 = vsub.f32 %v2539_v40, %v2572_v4  ;;  %v2582_v8 = vsub.f32 %v2540_v46, %v2572_v4 }
 0x930   : > { %v2587_v9 = vmul.f32 1.442695, %v2579_v5  ;;  %v2589_v10 = vmul.f32 1.442695, %v2580_v6  ;;  %v2591_v11 = vmul.f32 1.442695, %v2581_v7 }
 0x931   : > { %v2593_v12 = vmul.f32 1.442695, %v2582_v8  ;;  %v2577_v13 = vpop.permute.xlu1 %2576 }
 0x932   : > { %3958 = vpow2.f32 %v2587_v9  ;;  %v2583_v14 = vsub.f32 %v2541_v49, %v2577_v13  ;;  %v2584_v15 = vsub.f32 %v2542_v53, %v2577_v13  ;;  %v2585_v17 = vsub.f32 %v2543_v50, %v2577_v13 }
 0x933   : > { %3960 = vpow2.f32 %v2589_v10  ;;  %v2586_v19 = vsub.f32 %v2544_v54, %v2577_v13 }
 0x934   : > { %3962 = vpow2.f32 %v2591_v11  ;;  %v2595_v20 = vmul.f32 1.442695, %v2583_v14  ;;  %v2597_v21 = vmul.f32 1.442695, %v2584_v15  ;;  %v2599_v22 = vmul.f32 1.442695, %v2585_v17 }
 0x935   : > { %3964 = vpow2.f32 %v2593_v12  ;;  %v2601_v23 = vmul.f32 1.442695, %v2586_v19 }
 0x936   : > { %3966 = vpow2.f32 %v2595_v20 }
 0x937   : > { %3968 = vpow2.f32 %v2597_v21 }
 0x938   : > { %3970 = vpow2.f32 %v2599_v22 }
 0x939   : > { %3972 = vpow2.f32 %v2601_v23 }
 0x93a   : > { %3974 = vpow2.f32 %v2563_v37 }
 0x93b   : > { %3976 = vpow2.f32 %v2565_v38 }
 0x93c   : > { %v3959_v24 = vpop.eup %3958 }
 0x93d   : > { %v3961_v25 = vpop.eup %3960 }
 0x93e   : > { %v3963_v26 = vpop.eup %3962  ;;  %v2603_v27 = vadd.f32 %v3961_v25, %v3959_v24 }
 0x93f   : > { %v3965_v62 = vpop.eup %3964 }
 0x940   : > { %v3967_v28 = vpop.eup %3966  ;;  %v2604_v29 = vadd.f32 %v3963_v26, %v2603_v27 }
 0x941   : > { %v3969_v30 = vpop.eup %3968 }
 0x942   : > { %v2605_v31 = vadd.f32 %v3965_v62, %v2604_v29  ;;  %v2608_v32 = vadd.f32 %v3969_v30, %v3967_v28  ;;  %v3971_v33 = vpop.eup %3970 }
 0x943   : > { %v3973_v35 = vpop.eup %3972 }
 0x944   : > { %2606 = vadd.xlane.f32.xlu0 %v2605_v31  ;;  %v2609_v34 = vadd.f32 %v3971_v33, %v2608_v32  ;;  %v3975_v16 = vpop.eup %3974 }
 0x945   : > { %v2567_v18 = vmul.f32 %v3975_v16, %v2559_v39  ;;  %v3977_v40 = vpop.eup %3976 }
 0x946   : > { %v2610_v36 = vadd.f32 %v3973_v35, %v2609_v34  ;;  %v2568_v44 = vmul.f32 %v3977_v40, %v2560_v42 }
 0x948   : > { %2611 = vadd.xlane.f32.xlu1 %v2610_v36 }
 0x9d1   : > { %v2607_v41 = vpop.xlane.xlu0 %2606 }
 0x9d2   : > { %v2613_v43 = vadd.f32 %v2607_v41, %v2567_v18  ;;  %2623 = sbr.rel (%p3405_p7) target bundleno = 2540 (0x9ec), region = 162 }
 0x9d4   : > { %2616 = vst.msk [vmem:[#allocation5] sm:$0xff] %vm2615_vm7, %v2613_v43 }
 0x9d5   : > { %v2612_v45 = vpop.xlane.xlu1 %2611 }
 0x9d6   : > { %v2614_v46 = vadd.f32 %v2612_v45, %v2568_v44 }
 0x9d8   : > { %2617 = vst.msk [vmem:[#allocation5 + $0x8] sm:$0xff] %vm2615_vm7, %v2614_v46 }
 0x9db   : > { %v2624_v47 = vld [vmem:[#allocation5] sm:$0xff] }
 0x9dc   : > { %3978 = vrcp.f32 %v2624_v47 }
 0x9df   : > { %v2625_v48 = vld [vmem:[#allocation5 + $0x8] sm:$0xff] }
 0x9e0   : > { %3980 = vrcp.f32 %v2625_v48 }
 0x9e6   : > { %v3979_v49 = vpop.eup %3978 }
 0x9e7   : > { %2630 = vst.msk [vmem:[#allocation5] sm:$0xff] %vm2615_vm7, %v3979_v49 }
 0x9ea   : > { %v3981_v50 = vpop.eup %3980 }
 0x9eb   : > { %2631 = vst.msk [vmem:[#allocation5 + $0x8] sm:$0xff] %vm2615_vm7, %v3981_v50 }
 0x9ec PF: > { %p3406_p5 = scmp.ne.s32.totalorder %s4162_s24, 2 }
 0x9ed   : > { %v3984_v51 = vld [vmem:[%s4519_s25 + $0x4] ss:$16 sps:$4 sm:$0xff] (!%p3406_p5)   ;;  %v3986_v52 = vld [vmem:[%s4519_s25 + $0xc] ss:$16 sps:$4 sm:$0xff] (!%p3406_p5)   ;;  %v4183_v53 = vmov (!%p3406_p5), 0   ;;  %v2671_v62 = vlaneseq (!%p3406_p5)  ;;  %s3439_s12 = sshll.u32 (!%p3406_p5), %s4158_s23, 9 }
 0x9ee   : > { %2635 = sbr.rel (%p3406_p5) target bundleno = 2816 (0xb00), region = 166  ;;  %2883 = vmatprep.mubr.bf16.mxu0 (!%p3406_p5), %v4183_v53  ;;  %2926 = vmatprep.mubr.bf16.mxu1 (!%p3406_p5), %v4183_v53  ;;  %v3988_v54 = vld [vmem:[%s4519_s25] ss:$16 sps:$4 sm:$0xff] (!%p3406_p5)   ;;  %v3989_v55 = vld [vmem:[%s4519_s25 + $0x8] ss:$16 sps:$4 sm:$0xff] (!%p3406_p5)   ;;  %v2943_v32 = vstv (!%p3406_p5), %s3439_s12 }
 0x9ef   : > { %2851 = vmatprep.subr.bf16.mxu0 (!%p3406_p5), %v3984_v51  ;;  %3982 = vset.pattern.permute.xlu0 (!%p3406_p5), %v4183_v53  ;;  %v3990_v56 = vld [vmem:[%s4519_s25 + $0x24] ss:$16 sps:$4 sm:$0xff] (!%p3406_p5)   ;;  %v3992_v57 = vld [vmem:[%s4519_s25 + $0x2c] ss:$16 sps:$4 sm:$0xff] (!%p3406_p5)   ;;  %v3994_v58 = vld [vmem:[%s4519_s25 + $0x20] ss:$16 sps:$4 sm:$0xff] (!%p3406_p5)  }
 0x9f0   : > { %2894 = vmatprep.subr.bf16.mxu1 (!%p3406_p5), %v3986_v52  ;;  %3983 = vset.pattern.permute.xlu1 (!%p3406_p5), %v4183_v53  ;;  %v3995_v59 = vld [vmem:[%s4519_s25 + $0x28] ss:$16 sps:$4 sm:$0xff] (!%p3406_p5)   ;;  %v3996_v60 = vld [vmem:[%s4519_s25 + $0x44] ss:$16 sps:$4 sm:$0xff] (!%p3406_p5)   ;;  %v3998_v61 = vld [vmem:[%s4519_s25 + $0x4c] ss:$16 sps:$4 sm:$0xff] (!%p3406_p5)  }
 0x9f1   : > { %2852 = vmatpush1.bf16.msra.mxu0 (!%p3406_p5), %v3988_v54  ;;  %2895 = vmatpush1.bf16.msra.mxu1 (!%p3406_p5), %v3989_v55  ;;  %v4000_v63 = vld [vmem:[%s4519_s25 + $0x40] ss:$16 sps:$4 sm:$0xff] (!%p3406_p5)   ;;  %v4001_v0 = vld [vmem:[%s4519_s25 + $0x48] ss:$16 sps:$4 sm:$0xff] (!%p3406_p5)   ;;  %v4002_v1 = vld [vmem:[%s4519_s25 + $0x64] ss:$16 sps:$4 sm:$0xff] (!%p3406_p5)  }
 0x9f2   : > { %2853 = vmatprep.subr.bf16.mxu0 (!%p3406_p5), %v3990_v56  ;;  %2896 = vmatprep.subr.bf16.mxu1 (!%p3406_p5), %v3992_v57  ;;  %v4004_v2 = vld [vmem:[%s4519_s25 + $0x6c] ss:$16 sps:$4 sm:$0xff] (!%p3406_p5)   ;;  %v4006_v3 = vld [vmem:[%s4519_s25 + $0x60] ss:$16 sps:$4 sm:$0xff] (!%p3406_p5)   ;;  %v4007_v4 = vld [vmem:[%s4519_s25 + $0x68] ss:$16 sps:$4 sm:$0xff] (!%p3406_p5)  }
 0x9f3   : > { %v4008_v5 = vld [vmem:[%s4519_s25 + $0x84] ss:$16 sps:$4 sm:$0xff] (!%p3406_p5)   ;;  %v4010_v6 = vld [vmem:[%s4519_s25 + $0x8c] ss:$16 sps:$4 sm:$0xff] (!%p3406_p5)   ;;  %v4012_v7 = vld [vmem:[%s4519_s25 + $0x80] ss:$16 sps:$4 sm:$0xff] (!%p3406_p5)  }
 0x9f4   : > { %v4013_v8 = vld [vmem:[%s4519_s25 + $0x88] ss:$16 sps:$4 sm:$0xff] (!%p3406_p5)   ;;  %v4014_v9 = vld [vmem:[%s4519_s25 + $0xa4] ss:$16 sps:$4 sm:$0xff] (!%p3406_p5)   ;;  %v4016_v10 = vld [vmem:[%s4519_s25 + $0xac] ss:$16 sps:$4 sm:$0xff] (!%p3406_p5)  }
 0x9f5   : > { %2854 = vmatpush1.bf16.msra.mxu0 %v3994_v58  ;;  %2897 = vmatpush1.bf16.msra.mxu1 %v3995_v59  ;;  %v4018_v11 = vld [vmem:[%s4519_s25 + $0xa0] ss:$16 sps:$4 sm:$0xff]   ;;  %v4019_v12 = vld [vmem:[%s4519_s25 + $0xa8] ss:$16 sps:$4 sm:$0xff]   ;;  %v4020_v13 = vld [vmem:[%s4519_s25 + $0xc4] ss:$16 sps:$4 sm:$0xff]  }
 0x9f6   : > { %2855 = vmatprep.subr.bf16.mxu0 %v3996_v60  ;;  %2898 = vmatprep.subr.bf16.mxu1 %v3998_v61  ;;  %v4022_v14 = vld [vmem:[%s4519_s25 + $0xcc] ss:$16 sps:$4 sm:$0xff]   ;;  %v2960_v15 = vld [vmem:[#allocation4] sm:$0xff]  ;;  %v2996_v17 = vld [vmem:[#allocation5] sm:$0xff]  ;;  %v2672_v28 = vshrl.u32 %v2671_v62, 7  ;;  %v2938_v29 = vand.u32 127, %v2671_v62 }
 0x9f7   : > { %2964 = vperm.xlu0 %3982, %v2960_v15   ;;  %v2961_v19 = vld [vmem:[#allocation4 + $0x8] sm:$0xff]  ;;  %3000 = vperm.xlu1 %3983, %v2996_v17   ;;  %v4024_v20 = vld [vmem:[%s4519_s25 + $0xc0] ss:$16 sps:$4 sm:$0xff]   ;;  %v2997_v22 = vld [vmem:[#allocation5 + $0x8] sm:$0xff] }
 0x9f8   : > { %v4025_v21 = vld [vmem:[%s4519_s25 + $0xc8] ss:$16 sps:$4 sm:$0xff]   ;;  %v4026_v23 = vld [vmem:[%s4519_s25 + $0xe4] ss:$16 sps:$4 sm:$0xff]   ;;  %v4028_v24 = vld [vmem:[%s4519_s25 + $0xec] ss:$16 sps:$4 sm:$0xff]   ;;  %v2944_v16 = vadd.s32 %v2943_v32, %v2938_v29 }
 0x9f9   : > { %2856 = vmatpush1.bf16.msra.mxu0 %v4000_v63  ;;  %2899 = vmatpush1.bf16.msra.mxu1 %v4001_v0  ;;  %v4030_v25 = vld [vmem:[%s4519_s25 + $0xe0] ss:$16 sps:$4 sm:$0xff]   ;;  %v4031_v26 = vld [vmem:[%s4519_s25 + $0xe8] ss:$16 sps:$4 sm:$0xff]   ;;  %v2673_v30 = vsub.s32 0, %v2672_v28  ;;  %v2940_v31 = vadd.s32 256, %v2938_v29 }
 0x9fa   : > { %2857 = vmatprep.subr.bf16.mxu0 %v4002_v1  ;;  %2900 = vmatprep.subr.bf16.mxu1 %v4004_v2  ;;  %v2636_v27 = vld [vmem:[#allocation3] sm:$0xff]  ;;  %v2681_v33 = vsub.s32 2, %v2672_v28  ;;  %v2939_v34 = vadd.s32 128, %v2938_v29  ;;  %v2941_v35 = vadd.s32 384, %v2938_v29  ;;  %v2677_v37 = vsub.s32 1, %v2672_v28 }
 0x9fb   : > { %2969 = vperm.xlu0 %3982, %v2961_v19   ;;  %3005 = vperm.xlu1 %3983, %v2997_v22   ;;  %v2669_v36 = vld [vmem:[%s4515_s18] sm:$0xf]  ;;  %v2685_v38 = vsub.s32 3, %v2672_v28  ;;  %v2946_v39 = vadd.s32 %v2943_v32, %v2940_v31  ;;  %vm2948_vm8 = vcmp.lt.s32.totalorder %v2944_v16, 1000 }
 0x9fc   : > { %v2674_v18 = vrot.slane %v2669_v36, %v2673_v30  ;;  %v2682_v40 = vrot.slane %v2669_v36, %v2681_v33  ;;  %v2945_v41 = vadd.s32 %v2943_v32, %v2939_v34  ;;  %v2947_v42 = vadd.s32 %v2943_v32, %v2941_v35 }
 0x9fd   : > { %2858 = vmatpush1.bf16.msra.mxu0 %v4006_v3  ;;  %2901 = vmatpush1.bf16.msra.mxu1 %v4007_v4  ;;  %v2678_v43 = vrot.slane %v2669_v36, %v2677_v37  ;;  %v2686_v44 = vrot.slane %v2669_v36, %v2685_v38  ;;  %vm2950_vm9 = vcmp.lt.s32.totalorder %v2946_v39, 1000 }
 0x9fe   : > { %2859 = vmatprep.subr.bf16.mxu0 %v4008_v5  ;;  %2902 = vmatprep.subr.bf16.mxu1 %v4010_v6  ;;  %vm2949_vm10 = vcmp.lt.s32.totalorder %v2945_v41, 1000  ;;  %vm2951_vm11 = vcmp.lt.s32.totalorder %v2947_v42, 1000 }
 0xa01   : > { %2860 = vmatpush1.bf16.msra.mxu0 %v4012_v7  ;;  %2903 = vmatpush1.bf16.msra.mxu1 %v4013_v8 }
 0xa02   : > { %2861 = vmatprep.subr.bf16.mxu0 %v4014_v9  ;;  %2904 = vmatprep.subr.bf16.mxu1 %v4016_v10 }
 0xa05   : > { %2862 = vmatpush1.bf16.msra.mxu0 %v4018_v11  ;;  %2905 = vmatpush1.bf16.msra.mxu1 %v4019_v12 }
 0xa06   : > { %2863 = vmatprep.subr.bf16.mxu0 %v4020_v13  ;;  %2906 = vmatprep.subr.bf16.mxu1 %v4022_v14 }
 0xa09   : > { %2864 = vmatpush1.bf16.msra.mxu0 %v4024_v20  ;;  %2907 = vmatpush1.bf16.msra.mxu1 %v4025_v21 }
 0xa0a   : > { %2865 = vmatprep.subr.bf16.mxu0 %v4026_v23  ;;  %2908 = vmatprep.subr.bf16.mxu1 %v4028_v24 }
 0xa0d   : > { %2866 = vmatpush1.bf16.msra.mxu0 %v4030_v25  ;;  %2909 = vmatpush1.bf16.msra.mxu1 %v4031_v26 }
 0xa10   : > { %2884 = vmatmul.mubr.bf16.vlgmr.msra.gmra.mrb[0].mxu0 %v2636_v27  ;;  %2927 = vmatmul.mubr.bf16.vlgmr.msra.gmra.mrb[0].mxu1 %v2636_v27 }
 0xa76   : > { %v2965_v45 = vpop.permute.xlu0 %2964  ;;  %v3001_v26 = vpop.permute.xlu1 %3000 }
 0xa7a   : > { %v2970_v5 = vpop.permute.xlu0 %2969  ;;  %v3006_v35 = vpop.permute.xlu1 %3005 }
 0xae3   : > { %v2885_v46 = vpop.f32.mrb[0].mxu0  ;;  %v2928_v47 = vpop.f32.mrb[0].mxu1 }
 0xae4   : > { %v2886_v48 = vadd.f32 %v2885_v46, %v2674_v18  ;;  %v2929_v49 = vadd.f32 %v2928_v47, %v2682_v40  ;;  %v2887_v50 = vpop.f32.mrb[1].mxu0  ;;  %v2930_v51 = vpop.f32.mrb[1].mxu1 }
 0xae5   : > { %v2888_v52 = vadd.f32 %v2887_v50, %v2678_v43  ;;  %v2931_v53 = vadd.f32 %v2930_v51, %v2686_v44  ;;  %v2889_v54 = vpop.f32.mrb[2].mxu0  ;;  %v2932_v55 = vpop.f32.mrb[2].mxu1 }
 0xae6   : > { %v2952_v56 = vsel %vm2948_vm8, %v2886_v48, -1e+30  ;;  %v2954_v57 = vsel %vm2950_vm9, %v2929_v49, -1e+30  ;;  %v2890_v58 = vadd.f32 %v2889_v54, %v2674_v18  ;;  %v2933_v59 = vadd.f32 %v2932_v55, %v2682_v40  ;;  %v2891_v60 = vpop.f32.mrb[3].mxu0  ;;  %v2934_v61 = vpop.f32.mrb[3].mxu1 }
 0xae7   : > { %v2972_v63 = vsub.f32 %v2952_v56, %v2965_v45  ;;  %v2974_v0 = vsub.f32 %v2954_v57, %v2965_v45  ;;  %v2953_v1 = vsel %vm2949_vm10, %v2888_v52, -1e+30  ;;  %v2955_v2 = vsel %vm2951_vm11, %v2931_v53, -1e+30 }
 0xae8   : > { %v2973_v3 = vsub.f32 %v2953_v1, %v2965_v45  ;;  %v2975_v4 = vsub.f32 %v2955_v2, %v2965_v45  ;;  %v2956_v6 = vsel %vm2948_vm8, %v2890_v58, -1e+30  ;;  %v2958_v7 = vsel %vm2950_vm9, %v2933_v59, -1e+30 }
 0xae9   : > { %v2980_v8 = vmul.f32 1.442695, %v2972_v63  ;;  %v2984_v9 = vmul.f32 1.442695, %v2974_v0  ;;  %v2976_v10 = vsub.f32 %v2956_v6, %v2970_v5  ;;  %v2978_v11 = vsub.f32 %v2958_v7, %v2970_v5 }
 0xaea   : > { %v2982_v12 = vmul.f32 1.442695, %v2973_v3  ;;  %v2986_v13 = vmul.f32 1.442695, %v2975_v4  ;;  %v2892_v14 = vadd.f32 %v2891_v60, %v2678_v43  ;;  %v2935_v15 = vadd.f32 %v2934_v61, %v2686_v44 }
 0xaeb   : > { %4032 = vpow2.f32 %v2980_v8  ;;  %v2988_v17 = vmul.f32 1.442695, %v2976_v10  ;;  %v2992_v19 = vmul.f32 1.442695, %v2978_v11 }
 0xaec   : > { %4034 = vpow2.f32 %v2984_v9  ;;  %v2957_v20 = vsel %vm2949_vm10, %v2892_v14, -1e+30  ;;  %v2959_v21 = vsel %vm2951_vm11, %v2935_v15, -1e+30 }
 0xaed   : > { %4036 = vpow2.f32 %v2982_v12  ;;  %v2977_v22 = vsub.f32 %v2957_v20, %v2970_v5  ;;  %v2979_v23 = vsub.f32 %v2959_v21, %v2970_v5 }
 0xaee   : > { %4038 = vpow2.f32 %v2986_v13 }
 0xaef   : > { %4040 = vpow2.f32 %v2988_v17  ;;  %v2990_v24 = vmul.f32 1.442695, %v2977_v22  ;;  %v2994_v25 = vmul.f32 1.442695, %v2979_v23 }
 0xaf0   : > { %4042 = vpow2.f32 %v2992_v19 }
 0xaf1   : > { %4044 = vpow2.f32 %v2990_v24 }
 0xaf2   : > { %4046 = vpow2.f32 %v2994_v25 }
 0xaf5   : > { %v4033_v27 = vpop.eup %4032 }
 0xaf6   : > { %v4035_v62 = vpop.eup %4034  ;;  %v3008_v28 = vmul.f32 %v4033_v27, %v3001_v26 }
 0xaf7   : > { %v4037_v29 = vpop.eup %4036  ;;  %v3010_v30 = vmul.f32 %v4035_v62, %v3001_v26 }
 0xaf8   : > { %v4039_v31 = vpop.eup %4038  ;;  %v3009_v32 = vmul.f32 %v4037_v29, %v3001_v26  ;;  %3016 = vst [vmem:[%s4521_s27] sm:$0xff] %v3008_v28 }
 0xaf9   : > { %v4041_v33 = vpop.eup %4040  ;;  %v3011_v34 = vmul.f32 %v4039_v31, %v3001_v26  ;;  %3018 = vst [vmem:[%s4521_s27 + $0x10] sm:$0xff] %v3010_v30 }
 0xafa   : > { %v4043_v36 = vpop.eup %4042  ;;  %3017 = vst [vmem:[%s4521_s27 + $0x8] sm:$0xff] %v3009_v32  ;;  %v3012_v37 = vmul.f32 %v4041_v33, %v3006_v35 }
 0xafb   : > { %v4045_v38 = vpop.eup %4044  ;;  %3019 = vst [vmem:[%s4521_s27 + $0x18] sm:$0xff] %v3011_v34  ;;  %v3014_v16 = vmul.f32 %v4043_v36, %v3006_v35 }
 0xafc   : > { %v4047_v39 = vpop.eup %4046  ;;  %v3013_v18 = vmul.f32 %v4045_v38, %v3006_v35  ;;  %3020 = vst [vmem:[%s4521_s27 + $0x20] sm:$0xff] %v3012_v37 }
 0xafd   : > { %v3015_v40 = vmul.f32 %v4047_v39, %v3006_v35  ;;  %3022 = vst [vmem:[%s4521_s27 + $0x30] sm:$0xff] %v3014_v16 }
 0xafe   : > { %3021 = vst [vmem:[%s4521_s27 + $0x28] sm:$0xff] %v3013_v18 }
 0xaff   : > { %3023 = vst [vmem:[%s4521_s27 + $0x38] sm:$0xff] %v3015_v40 }
 0xb00 PF: > { %p3042_p8 = scmp.eq.s32.totalorder %s4162_s24, 2  ;;  %s3053_s25 = sshll.u32 %s4521_s27, 4  ;;  %s4986_s25 = int_to_ptr.vmem [resolvable:$true] %s3053_s25 }
 0xb01   : > { %s5144_s21 = sld [smem:[#allocation33_spill]]  ;;  %s5146_s29 = sand.u32 1, %s4134_s30  }
 0xb02   : > { %s5169_s23 = smov (!%p3042_p8, %s4158_s23), 0  ;;  %s4995_s7 = scalar_lea.sflag [#allocation9], %s5146_s29 }
 0xb03   : > { %s3450_s18 = sshll.u32 %s5169_s23, 9  ;;  %s4048_s3 = scalar_lea.vmem %s4986_s25, 1024 }
 0xb04   : > { %p4049_p9 = scmp.ne.s32.totalorder %s4986_s25, %s4048_s3  ;;  %s4184_s24 = smov [#allocation8]  }
 0xb05   : > { %s4052_s27 = sshll.u32 %s4184_s24, 4  ;;  %s4053_s27 = int_to_ptr.vmem [resolvable:$false] %s4052_s27 }
 0xb06   : > { %p4050_p10 = pnand %p4049_p9, %p4401_p3  ;;  %s4054_s12 = scalar_lea.vmem %s4053_s27, 2048 }
 0xb07   : > { %s5145_s6 = smov %s5144_s21  ;;  %s4991_s16 = scalar_lea.hbm %s5144_s21, %s3450_s18 }
 0xb08   : > { %p4051_p11 = pneg %p4050_p10  ;;  %p4055_p12 = scmp.lt.s32.totalorder %s4986_s25, %s4053_s27 }
 0xb09   : > { %p4056_p13 = scmp.lt.s32.totalorder %s4054_s12, %s4048_s3 }
 0xb0b   : > { %p4057_p0 = por %p4056_p13, %p4055_p12 }
 0xb0d   : > { %p4058_p1 = pnand %p4057_p0, %p4051_p11 }
 0xb0f   : > { %4061 = shalt.err (!%p4058_p1)
}
 0xb10   : > { %s4062_s23 = scalar_lea.hbm %s4991_s16, 1024  ;;  %s4066_s22 = scalar_lea.hbm %s5145_s6, 2048 }
 0xb11   : > { %p4063_p2 = scmp.ne.s32.totalorder %s4991_s16, %s4062_s23  ;;  %p4067_p5 = scmp.lt.u32.totalorder %s4991_s16, %s5145_s6 }
 0xb12   : > { %p4068_p8 = scmp.lt.u32.totalorder %s4066_s22, %s4062_s23  ;;  %p4070_p10 = scmp.lt.u32.totalorder %s4062_s23, %s4991_s16 }
 0xb13   : > { %p4064_p4 = pnand %p4063_p2, %p4401_p3 }
 0xb14   : > { %p4069_p9 = por %p4068_p8, %p4067_p5 }
 0xb15   : > { %p4065_p7 = pneg %p4064_p4 }
 0xb16   : > { %p4071_p11 = por %p4070_p10, %p4069_p9 }
 0xb18   : > { %p4072_p12 = pnand %p4071_p11, %p4065_p7 }
 0xb1a   : > { %4075 = shalt.err (!%p4072_p12)
}
 0xb1b   : > { %s4185_s3 = smov 512   ;;  %s4186_s24 = smov 1024  }
 0xb1c   : > { %s4187_s27 = smov 32  }
 0xb1d   : > { %3600 = dma.vmem_to_hbm [thread:$0]  (%p4401_p3), %s4986_s25, 1024, %s4991_s16, %s4995_s7, %s4185_s3, %s4186_s24, %s4187_s27  }
 0xb1e PF: > { %p3606_p13 = scmp.ge.s32.totalorder %s4174_s26, 2  ;;  %s3077_s12 = sand.u32 1, %s4130_s0  }
 0xb1f   : > { %s3078_s23 = scalar_lea.sflag [#allocation9], %s3077_s12 }
 0xb20   : > { %p3603_p0 = pnand %p3606_p13, %p4410_p6 }
 0xb22   : > { %4125 = dma.done.wait (!%p3603_p0), %s3078_s23, 1024  }
 0xb23   : > { %4127 = vsyncadd (!%p3603_p0), %s3078_s23, 4294966272  ;;  %s33_s26 = sadd.s32 1, %s4174_s26   ;;  %s5147_s23 = sld [smem:[#allocation11_spill]] }
 0xb24   : > { %p30_p1 = scmp.ge.s32.totalorder %s33_s26, 8   ;;  %s5148_s24 = sld [smem:[#allocation12_spill]] }
 0xb25   : > { %s5149_s25 = sld [smem:[#allocation13_spill]]  ;;  %s5150_s3 = sld [smem:[#allocation14_spill]] }
 0xb26   : > { %s5151_s0 = smov %s4134_s30  ;;  %s5152_s30 = smov %s4138_s20 }
 0xb27   : > { %s5153_s20 = smov %s4408_s9  ;;  %s5154_s21 = smov %s4146_s1 }
 0xb28   : > { %s5155_s1 = smov %s4391_s8  ;;  %s5156_s22 = smov %s4154_s2 }
 0xb29   : > { %s5157_s2 = smov %s4388_s5  ;;  %32 = sbr.rel (!%p30_p1) target bundleno = 27 (0x1b), region = 235 }
 0xb30   :  { %3083 = vsyncpa [#allocation9], 1 }
 0xb31   :  { %3085 = vsyncpa [#allocation9 + $0x1], 1 }

</bundles_post_ra>
